<compile_context>
chip_gen: v5e
topology: v5e:2x2
jax: 0.10.0
libtpu: 0.0.40
codegen_flags: <defaults>
</compile_context>

<pallas_src>
import functools

import jax
import jax.numpy as jnp
from jax import lax
from jax.experimental import pallas as pl
from jax.experimental.pallas import tpu as pltpu


def _round_up(x, m):
    return (x + m - 1) // m * m


def _pick_tn(c_pad, a_pad, stream_bytes, budget):
    """Largest batch tile whose (double-buffered) footprint fits the VMEM budget."""
    margin = 2 * 1024 * 1024
    resident1 = 4 * c_pad * a_pad * 4 * 2          # cov/ave in + ncov/nave out (f32, x2 buf)
    resident2 = c_pad * c_pad * 4 * 2 + 8 * c_pad * 4   # M resident + loss accumulator
    for tn in (2048, 1024, 512, 256, 128):
        k1 = resident1 + (c_pad * tn + tn * a_pad) * stream_bytes * 2
        k2 = resident2 + 2 * tn * c_pad * stream_bytes * 2
        if max(k1, k2) + margin <= budget:
            return tn
    return 128


# ---------------------------------------------------------------------------
# Kernel 1: EstimatorCV.update_CV  (class statistics + state update)
# ---------------------------------------------------------------------------
def _update_cv_kernel(ones_col,                          # static: lane index of the ones column
                      labT_ref, feat_ref,                # streamed (C_pad,TN), (TN,A_pad)
                      cov_ref, ave_ref, amt_ref,         # resident f32 old state
                      ncov_ref, nave_ref, namt_ref):     # resident f32 outputs (= accumulators)
    i = pl.program_id(0)

    @pl.when(i == 0)
    def _init():
        nave_ref[...] = jnp.zeros_like(nave_ref)         # accumulates labels^T @ [f | 1]
        ncov_ref[...] = jnp.zeros_like(ncov_ref)         # accumulates labels^T @ f^2

    # stream native dtype, compute statistics in f32
    lab_t = labT_ref[...].astype(jnp.float32)            # (C_pad, TN)  one-hot
    f = feat_ref[...].astype(jnp.float32)                # (TN, A_pad)  col `ones_col` == 1
    nave_ref[...] += jnp.dot(lab_t, f, preferred_element_type=jnp.float32)
    ncov_ref[...] += jnp.dot(lab_t, f * f, preferred_element_type=jnp.float32)

    @pl.when(i == pl.num_programs(0) - 1)
    def _finalize():
        s_f = nave_ref[...]                              # (C_pad, A_pad) f32
        s_f2 = ncov_ref[...]
        cov = cov_ref[...]
        ave_old = ave_ref[...]
        amount = amt_ref[...]                            # (C_pad, 1)

        # per-class sample counts: the "ones" column of s_f (static one-lane slice)
        sum_w = s_f[:, ones_col:ones_col + 1]            # (C_pad, 1)

        amt_safe = jnp.where(sum_w == 0.0, 1.0, sum_w)   # Amount_CxA[Amount_CxA==0] = 1
        ave_cxa = s_f / amt_safe
        # sum_n labels*(features-ave)^2 / Amount, single-pass form (one-hot labels)
        var_temp = (s_f2 - ave_cxa * (2.0 * s_f - ave_cxa * sum_w)) / amt_safe

        w_cv = sum_w / (sum_w + amount)
        w_cv = jnp.where(w_cv != w_cv, 0.0, w_cv)        # NaN (0/0) -> 0
        additional = (w_cv * (1.0 - w_cv)) * (ave_old - ave_cxa) ** 2

        ncov_ref[...] = cov * (1.0 - w_cv) + var_temp * w_cv + additional
        nave_ref[...] = ave_old * (1.0 - w_cv) + ave_cxa * w_cv
        namt_ref[...] = amount + sum_w


# ---------------------------------------------------------------------------
# Kernel 2: isda_aug + BCEWithLogitsLoss(mean)
#   sigma2 = labels @ M   with   M = new_cov @ (W^2 * ratio/2)^T  precomputed.
# ---------------------------------------------------------------------------
def _aug_bce_kernel(inv_nc,                              # static: 1 / (N_real * C_real)
                    lab_ref, logit_ref, m_ref,           # streamed, streamed, resident
                    loss_ref,                            # (1, 1) f32 output
                    acc_ref):                            # (8, C_pad) f32 VMEM accumulator
    i = pl.program_id(0)

    @pl.when(i == 0)
    def _init():
        acc_ref[...] = jnp.zeros_like(acc_ref)

    lab = lab_ref[...].astype(jnp.float32)               # (TN, C_pad) one-hot
    logits = logit_ref[...].astype(jnp.float32)          # padded entries are -40
    m = m_ref[...]                                       # (C_pad, C_pad) f32

    # sigma2[n, c] = M[label(n), c]  ==  (labels @ M)[n, c]  for one-hot labels
    sigma2 = jnp.dot(lab, m, preferred_element_type=jnp.float32)     # (TN, C_pad)

    aug = logits + sigma2 * (1.0 - 2.0 * lab)
    # numerically stable BCE-with-logits; padded entries (aug = -40, lab = 0)
    # contribute ~exp(-40) ~ 0 to the sum.
    bce = jnp.maximum(aug, 0.0) - aug * lab + jnp.log(1.0 + jnp.exp(-jnp.abs(aug)))

    # fold (TN, C_pad) -> (8, C_pad) with pure VPU adds (sublane-aligned static slices);
    # the expensive cross-lane/sublane reduce happens once, in the final step.
    part = bce[0:8, :]
    for r0 in range(8, bce.shape[0], 8):
        part = part + bce[r0:r0 + 8, :]
    acc_ref[...] += part

    @pl.when(i == pl.num_programs(0) - 1)
    def _final():
        loss_ref[...] = jnp.sum(acc_ref[...], keepdims=True) * inv_nc


# ---------------------------------------------------------------------------
# Wrapper
# ---------------------------------------------------------------------------
def isda_bce_loss(ratio, features, target, output, fc_weight, cov, ave, amount):
    """ISDA_BCELoss.forward. Returns (loss, new_CoVariance, new_Ave, new_Amount)."""
    N, A = features.shape
    C = target.shape[1]
    f32 = jnp.float32

    # ---- lane/sublane aligned padded shapes --------------------------------
    A_pad = _round_up(A + 1, 128)          # +1: "ones" column for per-class counts
    C_pad = _round_up(C, 128)

    stream_bytes = max(features.dtype.itemsize, target.dtype.itemsize,
                       output.dtype.itemsize)

    # generation-aware VMEM budget (v5e/v6e: 128 MiB, v7x: 64 MiB)
    try:
        vmem_cap = int(pltpu.get_tpu_info().vmem_capacity_bytes)
    except Exception:
        vmem_cap = 64 * 1024 * 1024
    vmem_budget = max(32 * 1024 * 1024, int(vmem_cap * 0.85))

    TN = min(_pick_tn(C_pad, A_pad, stream_bytes, vmem_budget), _round_up(N, 128))
    N_pad = _round_up(N, TN)
    nt = N_pad // TN

    # ---- pad streamed operands (keep native dtypes) -------------------------
    feat_aug = jnp.concatenate([features, jnp.ones((N, 1), features.dtype)], axis=1)
    feat_p = jnp.pad(feat_aug, ((0, N_pad - N), (0, A_pad - (A + 1))))
    tgt_p = jnp.pad(target, ((0, N_pad - N), (0, C_pad - C)))
    labT_p = tgt_p.T                                                   # (C_pad, N_pad)
    # pad logits with a large negative constant -> padded BCE terms ~ exp(-40) ~ 0
    logit_p = jnp.pad(output, ((0, N_pad - N), (0, C_pad - C)),
                      constant_values=-40.0)

    cov_p = jnp.pad(cov.astype(f32), ((0, C_pad - C), (0, A_pad - A)))
    ave_p = jnp.pad(ave.astype(f32), ((0, C_pad - C), (0, A_pad - A)))
    amt_p = jnp.pad(amount.astype(f32).reshape(C, 1), ((0, C_pad - C), (0, 0)))

    cparams = pltpu.CompilerParams(
        dimension_semantics=("arbitrary",),       # grid axis is a reduction over N tiles
        vmem_limit_bytes=vmem_budget,
    )

    # ---- kernel 1: estimator state update ----------------------------------
    new_cov_p, new_ave_p, new_amt_p = pl.pallas_call(
        functools.partial(_update_cv_kernel, A),
        grid_spec=pltpu.PrefetchScalarGridSpec(
            num_scalar_prefetch=0,
            grid=(nt,),
            in_specs=[
                pl.BlockSpec((C_pad, TN), lambda i: (0, i)),       # labels^T tile
                pl.BlockSpec((TN, A_pad), lambda i: (i, 0)),       # [features | 1] tile
                pl.BlockSpec((C_pad, A_pad), lambda i: (0, 0)),    # CoVariance (resident)
                pl.BlockSpec((C_pad, A_pad), lambda i: (0, 0)),    # Ave        (resident)
                pl.BlockSpec((C_pad, 1), lambda i: (0, 0)),        # Amount     (resident)
            ],
            out_specs=(
                pl.BlockSpec((C_pad, A_pad), lambda i: (0, 0)),    # new CoVariance (= s_f2 acc)
                pl.BlockSpec((C_pad, A_pad), lambda i: (0, 0)),    # new Ave        (= s_f  acc)
                pl.BlockSpec((C_pad, 1), lambda i: (0, 0)),        # new Amount
            ),
        ),
        out_shape=(
            jax.ShapeDtypeStruct((C_pad, A_pad), f32),
            jax.ShapeDtypeStruct((C_pad, A_pad), f32),
            jax.ShapeDtypeStruct((C_pad, 1), f32),
        ),
        compiler_params=cparams,
    )(labT_p, feat_p, cov_p, ave_p, amt_p)

    # ---- fused per-class augmentation matrix (one small f32 matmul) --------
    w2_p = jnp.pad((fc_weight.astype(f32) ** 2) * (0.5 * ratio),
                   ((0, C_pad - C), (0, A_pad - A)))               # (C_pad, A_pad)
    # M[y, c] = sum_a new_cov[y, a] * W[c, a]^2 * ratio/2 ; padded cols of w2 are 0,
    # so the inert "ones" column of new_cov_p does not leak in.
    m_mat = jnp.dot(new_cov_p, w2_p.T, precision=lax.Precision.HIGHEST)   # (C_pad, C_pad) f32

    # ---- kernel 2: isda_aug + BCEWithLogitsLoss -----------------------------
    loss_p = pl.pallas_call(
        functools.partial(_aug_bce_kernel, float(1.0 / (N * C))),
        grid_spec=pltpu.PrefetchScalarGridSpec(
            num_scalar_prefetch=0,
            grid=(nt,),
            in_specs=[
                pl.BlockSpec((TN, C_pad), lambda i: (i, 0)),       # target tile
                pl.BlockSpec((TN, C_pad), lambda i: (i, 0)),       # logits tile (-40 padded)
                pl.BlockSpec((C_pad, C_pad), lambda i: (0, 0)),    # M (resident, f32)
            ],
            out_specs=pl.BlockSpec((1, 1), lambda i: (0, 0)),
            scratch_shapes=[pltpu.VMEM((8, C_pad), f32)],
        ),
        out_shape=jax.ShapeDtypeStruct((1, 1), f32),
        compiler_params=cparams,
    )(tgt_p, logit_p, m_mat)

    return (loss_p[0, 0],
            new_cov_p[:C, :A],
            new_ave_p[:C, :A],
            new_amt_p[:C, 0])


# ---------------------------------------------------------------------------
# Pure-JAX reference (mirrors the PyTorch module) for a sanity check.
# ---------------------------------------------------------------------------
def _reference(ratio, features, target, output, fc_weight, cov, ave, amount):
    f = features.astype(jnp.float32)
    t = target.astype(jnp.float32)
    o = output.astype(jnp.float32)
    w = fc_weight.astype(jnp.float32)
    N, A = f.shape
    C = t.shape[1]

    fbs = f[:, None, :] * t[:, :, None]                       # (N, C, A)
    amt_cxa = jnp.broadcast_to(t[:, :, None], (N, C, A)).sum(0)
    amt_cxa = jnp.where(amt_cxa == 0, 1.0, amt_cxa)
    ave_cxa = fbs.sum(0) / amt_cxa
    var_temp = fbs - ave_cxa[None, :, :] * t[:, :, None]
    var_temp = (var_temp ** 2).sum(0) / amt_cxa
    sum_w = t.sum(0)
    w_cv = sum_w / (sum_w + amount)
    w_cv = jnp.where(jnp.isnan(w_cv), 0.0, w_cv)
    add_cv = (w_cv * (1 - w_cv))[:, None] * (ave - ave_cxa) ** 2
    new_cov = cov * (1 - w_cv)[:, None] + var_temp * w_cv[:, None] + add_cv
    new_ave = ave * (1 - w_cv)[:, None] + ave_cxa * w_cv[:, None]
    new_amt = amount + sum_w

    cv_temp = new_cov[jnp.argmax(t, axis=1)]                  # one-hot target row select
    sigma2 = ((w ** 2)[None, :, :] * cv_temp[:, None, :]).sum(2) * ratio * 0.5
    aug = o + sigma2 * (1 - 2 * t)
    bce = jnp.maximum(aug, 0.0) - aug * t + jnp.log1p(jnp.exp(-jnp.abs(aug)))
    return bce.mean(), new_cov, new_ave, new_amt


if __name__ == "__main__":
    import numpy as np

    key = jax.random.PRNGKey(0)
    N, A, C = 8, 32, 4            # batch, feature_num, class_num
    k1, k2, k3, k4 = jax.random.split(key, 4)

    features = jax.random.normal(k1, (N, A), dtype=jnp.float32)
    cls = jax.random.randint(k2, (N,), 0, C)
    target = jax.nn.one_hot(cls, C, dtype=jnp.float32)        # (N, C) one-hot
    output = jax.random.normal(k3, (N, C), dtype=jnp.float32)
    fc_weight = 0.1 * jax.random.normal(k4, (C, A), dtype=jnp.float32)

    cov0 = jnp.zeros((C, A), jnp.float32)
    ave0 = jnp.zeros((C, A), jnp.float32)
    amt0 = jnp.zeros((C,), jnp.float32)
    ratio = 0.5

    loss, new_cov, new_ave, new_amt = isda_bce_loss(
        ratio, features, target, output, fc_weight, cov0, ave0, amt0)
    jax.block_until_ready((loss, new_cov, new_ave, new_amt))

    ref_loss, ref_cov, ref_ave, ref_amt = _reference(
        ratio, features, target, output, fc_weight, cov0, ave0, amt0)

    # loose tolerances: MXU default-precision f32 matmuls vs exact elementwise ref
    np.testing.assert_allclose(np.asarray(loss), np.asarray(ref_loss), rtol=2e-2, atol=1e-3)
    np.testing.assert_allclose(np.asarray(new_cov), np.asarray(ref_cov), rtol=2e-2, atol=1e-3)
    np.testing.assert_allclose(np.asarray(new_ave), np.asarray(ref_ave), rtol=2e-2, atol=1e-3)
    np.testing.assert_allclose(np.asarray(new_amt), np.asarray(ref_amt), rtol=1e-5, atol=1e-5)

    print("KERNEL_OK")
</pallas_src>

<mosaic_0001>
module attributes {stable_mosaic.version = 11 : i64} {
  func.func @_update_cv_kernel(%arg0: i32, %arg1: memref<128x128xf32, #tpu.memory_space<vmem>>, %arg2: memref<128x128xf32, #tpu.memory_space<vmem>>, %arg3: memref<128x128xf32, #tpu.memory_space<vmem>>, %arg4: memref<128x128xf32, #tpu.memory_space<vmem>>, %arg5: memref<128x1xf32, #tpu.memory_space<vmem>>, %arg6: memref<128x128xf32, #tpu.memory_space<vmem>>, %arg7: memref<128x128xf32, #tpu.memory_space<vmem>>, %arg8: memref<128x1xf32, #tpu.memory_space<vmem>>) attributes {dimension_semantics = [#tpu.dimension_semantics<arbitrary>], iteration_bounds = array<i64: 1>, scalar_prefetch = 0 : i64, scratch_operands = 0 : i64, tpu.core_type = #tpu.core_type<tc>, window_params = [{transform_indices = @transform_0, window_bounds = array<i64: 128, 128>}, {transform_indices = @transform_1, window_bounds = array<i64: 128, 128>}, {pipeline_mode = #tpu.pipeline_mode<synchronous>, transform_indices = @transform_2, window_bounds = array<i64: 128, 128>}, {pipeline_mode = #tpu.pipeline_mode<synchronous>, transform_indices = @transform_3, window_bounds = array<i64: 128, 128>}, {pipeline_mode = #tpu.pipeline_mode<synchronous>, transform_indices = @transform_4, window_bounds = array<i64: 128, 1>}, {pipeline_mode = #tpu.pipeline_mode<synchronous>, transform_indices = @transform_5, window_bounds = array<i64: 128, 128>}, {pipeline_mode = #tpu.pipeline_mode<synchronous>, transform_indices = @transform_6, window_bounds = array<i64: 128, 128>}, {pipeline_mode = #tpu.pipeline_mode<synchronous>, transform_indices = @transform_7, window_bounds = array<i64: 128, 1>}]} {
    %c0_i32 = arith.constant 0 : i32
    %0 = arith.cmpi eq, %arg0, %c0_i32 : i32
    %1 = arith.extui %0 : i1 to i32
    %c0_i32_0 = arith.constant 0 : i32
    %2 = arith.cmpi ne, %1, %c0_i32_0 : i32
    scf.if %2 {
      %cst_15 = arith.constant 0.000000e+00 : f32
      %17 = vector.broadcast %cst_15 : f32 to vector<128x128xf32>
      %c0_16 = arith.constant 0 : index
      %c0_17 = arith.constant 0 : index
      %18 = vector.load %arg7[%c0_16, %c0_17] : memref<128x128xf32, #tpu.memory_space<vmem>>, vector<128x128xf32>
      tpu.vector_store %arg7[%c0_16, %c0_17], %17 {strides = array<i32>} : memref<128x128xf32, #tpu.memory_space<vmem>>, vector<128x128xf32>,
      %cst_18 = arith.constant 0.000000e+00 : f32
      %19 = vector.broadcast %cst_18 : f32 to vector<128x128xf32>
      %c0_19 = arith.constant 0 : index
      %c0_20 = arith.constant 0 : index
      %20 = vector.load %arg6[%c0_19, %c0_20] : memref<128x128xf32, #tpu.memory_space<vmem>>, vector<128x128xf32>
      tpu.vector_store %arg6[%c0_19, %c0_20], %19 {strides = array<i32>} : memref<128x128xf32, #tpu.memory_space<vmem>>, vector<128x128xf32>,
    } else {
    }
    %c0 = arith.constant 0 : index
    %c0_1 = arith.constant 0 : index
    %3 = vector.load %arg1[%c0, %c0_1] : memref<128x128xf32, #tpu.memory_space<vmem>>, vector<128x128xf32>
    %c0_2 = arith.constant 0 : index
    %c0_3 = arith.constant 0 : index
    %4 = vector.load %arg2[%c0_2, %c0_3] : memref<128x128xf32, #tpu.memory_space<vmem>>, vector<128x128xf32>
    %c0_4 = arith.constant 0 : index
    %c0_5 = arith.constant 0 : index
    %5 = vector.load %arg7[%c0_4, %c0_5] : memref<128x128xf32, #tpu.memory_space<vmem>>, vector<128x128xf32>
    %cst = arith.constant dense<0.000000e+00> : vector<128x128xf32>
    %6 = tpu.matmul %3, %4, %cst {dimension_numbers = #tpu.dot_dimension_numbers<[1], [0], [0], [1], [0, 0, 1, 1], [], []>} : vector<128x128xf32>, vector<128x128xf32>, vector<128x128xf32> -> vector<128x128xf32>
    %7 = arith.addf %5, %6 : vector<128x128xf32>
    %c0_6 = arith.constant 0 : index
    %c0_7 = arith.constant 0 : index
    %8 = vector.load %arg7[%c0_6, %c0_7] : memref<128x128xf32, #tpu.memory_space<vmem>>, vector<128x128xf32>
    tpu.vector_store %arg7[%c0_6, %c0_7], %7 {strides = array<i32>} : memref<128x128xf32, #tpu.memory_space<vmem>>, vector<128x128xf32>,
    %c0_8 = arith.constant 0 : index
    %c0_9 = arith.constant 0 : index
    %9 = vector.load %arg6[%c0_8, %c0_9] : memref<128x128xf32, #tpu.memory_space<vmem>>, vector<128x128xf32>
    %10 = arith.mulf %4, %4 : vector<128x128xf32>
    %cst_10 = arith.constant dense<0.000000e+00> : vector<128x128xf32>
    %11 = tpu.matmul %3, %10, %cst_10 {dimension_numbers = #tpu.dot_dimension_numbers<[1], [0], [0], [1], [0, 0, 1, 1], [], []>} : vector<128x128xf32>, vector<128x128xf32>, vector<128x128xf32> -> vector<128x128xf32>
    %12 = arith.addf %9, %11 : vector<128x128xf32>
    %c0_11 = arith.constant 0 : index
    %c0_12 = arith.constant 0 : index
    %13 = vector.load %arg6[%c0_11, %c0_12] : memref<128x128xf32, #tpu.memory_space<vmem>>, vector<128x128xf32>
    tpu.vector_store %arg6[%c0_11, %c0_12], %12 {strides = array<i32>} : memref<128x128xf32, #tpu.memory_space<vmem>>, vector<128x128xf32>,
    %c0_i32_13 = arith.constant 0 : i32
    %14 = arith.cmpi eq, %arg0, %c0_i32_13 : i32
    %15 = arith.extui %14 : i1 to i32
    %c0_i32_14 = arith.constant 0 : i32
    %16 = arith.cmpi ne, %15, %c0_i32_14 : i32
    scf.if %16 {
      %c0_15 = arith.constant 0 : index
      %c0_16 = arith.constant 0 : index
      %17 = vector.load %arg7[%c0_15, %c0_16] : memref<128x128xf32, #tpu.memory_space<vmem>>, vector<128x128xf32>
      %c0_17 = arith.constant 0 : index
      %c0_18 = arith.constant 0 : index
      %18 = vector.load %arg6[%c0_17, %c0_18] : memref<128x128xf32, #tpu.memory_space<vmem>>, vector<128x128xf32>
      %c0_19 = arith.constant 0 : index
      %c0_20 = arith.constant 0 : index
      %19 = vector.load %arg3[%c0_19, %c0_20] : memref<128x128xf32, #tpu.memory_space<vmem>>, vector<128x128xf32>
      %c0_21 = arith.constant 0 : index
      %c0_22 = arith.constant 0 : index
      %20 = vector.load %arg4[%c0_21, %c0_22] : memref<128x128xf32, #tpu.memory_space<vmem>>, vector<128x128xf32>
      %c0_23 = arith.constant 0 : index
      %c0_24 = arith.constant 0 : index
      %21 = vector.load %arg5[%c0_23, %c0_24] : memref<128x1xf32, #tpu.memory_space<vmem>>, vector<128x1xf32>
      %22 = vector.extract_strided_slice %17 {offsets = [0, 32], sizes = [128, 1], strides = [1, 1]} : vector<128x128xf32> to vector<128x1xf32>
      %cst_25 = arith.constant 0.000000e+00 : f32
      %23 = vector.broadcast %cst_25 : f32 to vector<128x1xf32>
      %24 = arith.cmpf oeq, %22, %23 : vector<128x1xf32>
      %cst_26 = arith.constant 1.000000e+00 : f32
      %25 = vector.broadcast %cst_26 : f32 to vector<128x1xf32>
      %26 = arith.select %24, %25, %22 : vector<128x1xi1>, vector<128x1xf32>
      %27 = vector.broadcast %26 : vector<128x1xf32> to vector<128x128xf32>
      %28 = arith.divf %17, %27 : vector<128x128xf32>
      %cst_27 = arith.constant 2.000000e+00 : f32
      %29 = vector.broadcast %cst_27 : f32 to vector<128x128xf32>
      %30 = arith.mulf %29, %17 : vector<128x128xf32>
      %31 = vector.broadcast %22 : vector<128x1xf32> to vector<128x128xf32>
      %32 = arith.mulf %28, %31 : vector<128x128xf32>
      %33 = arith.subf %30, %32 : vector<128x128xf32>
      %34 = arith.mulf %28, %33 : vector<128x128xf32>
      %35 = arith.subf %18, %34 : vector<128x128xf32>
      %36 = vector.broadcast %26 : vector<128x1xf32> to vector<128x128xf32>
      %37 = arith.divf %35, %36 : vector<128x128xf32>
      %38 = arith.addf %22, %21 : vector<128x1xf32>
      %39 = arith.divf %22, %38 : vector<128x1xf32>
      %40 = arith.cmpf one, %39, %39 : vector<128x1xf32>
      %cst_28 = arith.constant 0.000000e+00 : f32
      %41 = vector.broadcast %cst_28 : f32 to vector<128x1xf32>
      %42 = arith.select %40, %41, %39 : vector<128x1xi1>, vector<128x1xf32>
      %cst_29 = arith.constant 1.000000e+00 : f32
      %43 = vector.broadcast %cst_29 : f32 to vector<128x1xf32>
      %44 = arith.subf %43, %42 : vector<128x1xf32>
      %45 = arith.mulf %42, %44 : vector<128x1xf32>
      %46 = arith.subf %20, %28 : vector<128x128xf32>
      %47 = arith.mulf %46, %46 : vector<128x128xf32>
      %48 = vector.broadcast %45 : vector<128x1xf32> to vector<128x128xf32>
      %49 = arith.mulf %48, %47 : vector<128x128xf32>
      %cst_30 = arith.constant 1.000000e+00 : f32
      %50 = vector.broadcast %cst_30 : f32 to vector<128x1xf32>
      %51 = arith.subf %50, %42 : vector<128x1xf32>
      %52 = vector.broadcast %51 : vector<128x1xf32> to vector<128x128xf32>
      %53 = arith.mulf %19, %52 : vector<128x128xf32>
      %54 = vector.broadcast %42 : vector<128x1xf32> to vector<128x128xf32>
      %55 = arith.mulf %37, %54 : vector<128x128xf32>
      %56 = arith.addf %53, %55 : vector<128x128xf32>
      %57 = arith.addf %56, %49 : vector<128x128xf32>
      %c0_31 = arith.constant 0 : index
      %c0_32 = arith.constant 0 : index
      %58 = vector.load %arg6[%c0_31, %c0_32] : memref<128x128xf32, #tpu.memory_space<vmem>>, vector<128x128xf32>
      tpu.vector_store %arg6[%c0_31, %c0_32], %57 {strides = array<i32>} : memref<128x128xf32, #tpu.memory_space<vmem>>, vector<128x128xf32>,
      %cst_33 = arith.constant 1.000000e+00 : f32
      %59 = vector.broadcast %cst_33 : f32 to vector<128x1xf32>
      %60 = arith.subf %59, %42 : vector<128x1xf32>
      %61 = vector.broadcast %60 : vector<128x1xf32> to vector<128x128xf32>
      %62 = arith.mulf %20, %61 : vector<128x128xf32>
      %63 = vector.broadcast %42 : vector<128x1xf32> to vector<128x128xf32>
      %64 = arith.mulf %28, %63 : vector<128x128xf32>
      %65 = arith.addf %62, %64 : vector<128x128xf32>
      %c0_34 = arith.constant 0 : index
      %c0_35 = arith.constant 0 : index
      %66 = vector.load %arg7[%c0_34, %c0_35] : memref<128x128xf32, #tpu.memory_space<vmem>>, vector<128x128xf32>
      tpu.vector_store %arg7[%c0_34, %c0_35], %65 {strides = array<i32>} : memref<128x128xf32, #tpu.memory_space<vmem>>, vector<128x128xf32>,
      %67 = arith.addf %21, %22 : vector<128x1xf32>
      %c0_36 = arith.constant 0 : index
      %c0_37 = arith.constant 0 : index
      %68 = vector.load %arg8[%c0_36, %c0_37] : memref<128x1xf32, #tpu.memory_space<vmem>>, vector<128x1xf32>
      tpu.vector_store %arg8[%c0_36, %c0_37], %67 {strides = array<i32>} : memref<128x1xf32, #tpu.memory_space<vmem>>, vector<128x1xf32>,
    } else {
    }
    return
  }
  func.func @transform_0(%arg0: i32) -> (i32, i32) {
    %c0_i32 = arith.constant 0 : i32
    %c0_i32_0 = arith.constant 0 : i32
    return %c0_i32, %arg0 : i32, i32
  }
  func.func @transform_1(%arg0: i32) -> (i32, i32) {
    %c0_i32 = arith.constant 0 : i32
    %c0_i32_0 = arith.constant 0 : i32
    return %arg0, %c0_i32 : i32, i32
  }
  func.func @transform_2(%arg0: i32) -> (i32, i32) {
    %c0_i32 = arith.constant 0 : i32
    %c0_i32_0 = arith.constant 0 : i32
    %c0_i32_1 = arith.constant 0 : i32
    return %c0_i32, %c0_i32_0 : i32, i32
  }
  func.func @transform_3(%arg0: i32) -> (i32, i32) {
    %c0_i32 = arith.constant 0 : i32
    %c0_i32_0 = arith.constant 0 : i32
    %c0_i32_1 = arith.constant 0 : i32
    return %c0_i32, %c0_i32_0 : i32, i32
  }
  func.func @transform_4(%arg0: i32) -> (i32, i32) {
    %c0_i32 = arith.constant 0 : i32
    %c0_i32_0 = arith.constant 0 : i32
    %c0_i32_1 = arith.constant 0 : i32
    return %c0_i32, %c0_i32_0 : i32, i32
  }
  func.func @transform_5(%arg0: i32) -> (i32, i32) {
    %c0_i32 = arith.constant 0 : i32
    %c0_i32_0 = arith.constant 0 : i32
    %c0_i32_1 = arith.constant 0 : i32
    return %c0_i32, %c0_i32_0 : i32, i32
  }
  func.func @transform_6(%arg0: i32) -> (i32, i32) {
    %c0_i32 = arith.constant 0 : i32
    %c0_i32_0 = arith.constant 0 : i32
    %c0_i32_1 = arith.constant 0 : i32
    return %c0_i32, %c0_i32_0 : i32, i32
  }
  func.func @transform_7(%arg0: i32) -> (i32, i32) {
    %c0_i32 = arith.constant 0 : i32
    %c0_i32_0 = arith.constant 0 : i32
    %c0_i32_1 = arith.constant 0 : i32
    return %c0_i32, %c0_i32_0 : i32, i32
  }
}

</mosaic_0001>

<bundles_post_ra>
// kernel: tpu_custom_call.1
= control target key start
LH: loop header
LB: loop body
LE: loop exit
PB: predicated region body
PF: predicated region fallthrough
CT: control target
= control target key end

     0   :  { %13 = vsyncpa [#allocation3], 0  ;;  %s3764_s0 = inlined_call_operand.vmem [shape: f32[128,128], index: 0, kind: input, shape index: {}]   ;;  %s3765_s1 = inlined_call_operand.hbm [shape: f32[128,128], index: 1, kind: input, shape index: {}]   ;;  %s3766_s2 = inlined_call_operand.hbm [shape: f32[128,128], index: 2, kind: input, shape index: {}]   ;;  %s3767_s3 = inlined_call_operand.hbm [shape: f32[128,128], index: 3, kind: input, shape index: {}]   ;;  %s3768_s4 = inlined_call_operand.vmem [shape: f32[128,1], index: 4, kind: input, shape index: {}]   ;;  %s3769_s5 = inlined_call_operand.hbm [shape: f32[128,128], index: 5, kind: output, shape index: {0}]   ;;  %s3770_s6 = inlined_call_operand.hbm [shape: f32[128,128], index: 6, kind: output, shape index: {1}]   ;;  %s3771_s7 = inlined_call_operand.vmem [shape: f32[128,1], index: 7, kind: output, shape index: {2}]  }
   0x1   :  { %14 = vsyncpa [#allocation6], 0 }
   0x2   :  { %15 = vsyncpa [#allocation4], 0 }
   0x3   :  { %16 = vsyncpa [#allocation10], 0  ;;  %s36_s26 = sshll.u32 %s3766_s2, 4  ;;  %s2170_s27 = smov [#allocation5]   ;;  %s37_s26 = int_to_ptr.hbm [resolvable:$true] %s36_s26 }
   0x4   :  { %s38_s28 = sshll.u32 %s2170_s27, 4  ;;  %s23_s8 = sshll.u32 %s3765_s1, 4  ;;  %s39_s28 = int_to_ptr.vmem [resolvable:$true] %s38_s28  ;;  %s24_s8 = int_to_ptr.hbm [resolvable:$true] %s23_s8 }
   0x5   :  { %s2171_s9 = smov 128   ;;  %s2172_s10 = smov 8  }
   0x6   :  { %44 = dma.hbm_to_vmem [thread:$0]  %s37_s26, 2048, %s39_s28, [#allocation6], %s2171_s9, %s2171_s9, %s2172_s10  }
   0x7   :  { %s2173_s11 = smov [#allocation2]   ;;  %s49_s2 = sshll.u32 %s3767_s3, 4  ;;  %s50_s2 = int_to_ptr.hbm [resolvable:$true] %s49_s2 }
   0x8   :  { %s25_s12 = sshll.u32 %s2173_s11, 4  ;;  %s2174_s1 = smov [#allocation7]   ;;  %s26_s12 = int_to_ptr.vmem [resolvable:$true] %s25_s12 }
   0x9   :  { %31 = dma.hbm_to_vmem [thread:$0]  %s24_s8, 2048, %s26_s12, [#allocation3], %s2171_s9, %s2171_s9, %s2172_s10  }
   0xa   :  { %s51_s15 = sshll.u32 %s2174_s1, 4  ;;  %s52_s15 = int_to_ptr.vmem [resolvable:$true] %s51_s15 }
   0xb   :  { %57 = dma.hbm_to_vmem [thread:$0]  %s50_s2, 2048, %s52_s15, [#allocation6], %s2171_s9, %s2171_s9, %s2172_s10  }
   0xc   :  { %2162 = dma.done.wait [#allocation3], 2048  }
   0xd   :  { %2163 = vsyncadd [#allocation3], 4294965248 }
   0xe   :  { %2164 = dma.done.wait [#allocation6], 4096  }
   0xf   :  { %2165 = vsyncadd [#allocation6], 4294963200  ;;  %v2238_v0 = vld [vmem:[#allocation2 + $0x78] sm:$0xff]  ;;  %v2240_v1 = vld [vmem:[#allocation2 + $0x70] sm:$0xff]  ;;  %s2175_s17 = smov 32   ;;  %v2176_v62 = vmov 32  }
  0x10   :  { %156 = vmatpush.msra.mxu0 %v2238_v0  ;;  %1932 = vmatpush.msra.mxu2 %v2238_v0  ;;  %v2244_v2 = vld [vmem:[#allocation2 + $0x68] sm:$0xff]  ;;  %v2248_v3 = vld [vmem:[#allocation2 + $0x60] sm:$0xff]  ;;  %v2252_v4 = vld [vmem:[#allocation2 + $0x58] sm:$0xff]  ;;  %v284_v36 = vmul.f32 %v2238_v0, %v2238_v0  ;;  %v283_v37 = vmul.f32 %v2240_v1, %v2240_v1  ;;  %s2178_s21 = smov [#allocation9]   ;;  %s1909_s25 = sshll.u32 %s3770_s6, 4  ;;  %s1910_s25 = int_to_ptr.hbm [resolvable:$true] %s1909_s25 }
  0x11   :  { %v451_v5 = vld [vmem:[%s3768_s4 + $0x10] sm:$0xff]  ;;  %v2264_v7 = vld [vmem:[#allocation2 + $0x48] sm:$0xff]  ;;  %v2271_v9 = vld [vmem:[#allocation2 + $0x40] sm:$0xff]  ;;  %v282_v41 = vmul.f32 %v2244_v2, %v2244_v2  ;;  %v281_v44 = vmul.f32 %v2248_v3, %v2248_v3  ;;  %v280_v45 = vmul.f32 %v2252_v4, %v2252_v4  ;;  %1975 = vset.pattern.permute.xlu1 %v2176_v62  ;;  %1976 = vset.pattern.permute.xlu0 %v2176_v62  ;;  %s1907_s22 = sshll.u32 %s2178_s21, 4  ;;  %s2179_s29 = smov [#allocation8]   ;;  %s1908_s22 = int_to_ptr.vmem [resolvable:$true] %s1907_s22 }
  0x12   :  { %157 = vmatpush.msra.mxu0 %v2240_v1  ;;  %1933 = vmatpush.msra.mxu2 %v2240_v1  ;;  %v2259_v6 = vld [vmem:[#allocation2 + $0x50] sm:$0xff]  ;;  %v450_v8 = vld [vmem:[%s3768_s4 + $0x8] sm:$0xff]  ;;  %v2279_v11 = vld [vmem:[#allocation2 + $0x38] sm:$0xff]  ;;  %v278_v47 = vmul.f32 %v2264_v7, %v2264_v7  ;;  %v277_v50 = vmul.f32 %v2271_v9, %v2271_v9  ;;  %s1894_s30 = sshll.u32 %s2179_s29, 4  ;;  %s1895_s30 = int_to_ptr.vmem [resolvable:$true] %s1894_s30 }
  0x13   :  { %1013 = vrot.lane.b32.xlu1 %v451_v5, %s2175_s17  ;;  %1011 = vrot.lane.b32.xlu0 %v450_v8, %s2175_s17  ;;  %v454_v10 = vld [vmem:[%s3768_s4 + $0x28] sm:$0xff]  ;;  %v2283_v12 = vld [vmem:[#allocation2 + $0x30] sm:$0xff]  ;;  %v453_v14 = vld [vmem:[%s3768_s4 + $0x20] sm:$0xff]  ;;  %v279_v46 = vmul.f32 %v2259_v6, %v2259_v6  ;;  %v276_v51 = vmul.f32 %v2279_v11, %v2279_v11 }
  0x14   :  { %158 = vmatpush.msra.mxu0 %v2244_v2  ;;  %1934 = vmatpush.msra.mxu2 %v2244_v2  ;;  %v2288_v13 = vld [vmem:[#allocation2 + $0x28] sm:$0xff]  ;;  %v2295_v15 = vld [vmem:[#allocation2 + $0x20] sm:$0xff]  ;;  %v2303_v17 = vld [vmem:[#allocation2 + $0x18] sm:$0xff]  ;;  %v275_v52 = vmul.f32 %v2283_v12, %v2283_v12 }
  0x15   :  { %v457_v16 = vld [vmem:[%s3768_s4 + $0x40] sm:$0xff]  ;;  %v2307_v18 = vld [vmem:[#allocation2 + $0x10] sm:$0xff]  ;;  %v2312_v19 = vld [vmem:[#allocation2 + $0x8] sm:$0xff]  ;;  %1948 = vmatpush.msra.mxu3 %v284_v36  ;;  %285 = vmatpush.msra.mxu1 %v284_v36  ;;  %v274_v53 = vmul.f32 %v2288_v13, %v2288_v13  ;;  %v273_v56 = vmul.f32 %v2295_v15, %v2295_v15  ;;  %v272_v59 = vmul.f32 %v2303_v17, %v2303_v17 }
  0x16   :  { %159 = vmatpush.msra.mxu0 %v2248_v3  ;;  %1935 = vmatpush.msra.mxu2 %v2248_v3  ;;  %v456_v20 = vld [vmem:[%s3768_s4 + $0x38] sm:$0xff]  ;;  %v449_v21 = vld [vmem:[%s3768_s4] sm:$0xff]  ;;  %v459_v25 = vld [vmem:[%s3768_s4 + $0x50] sm:$0xff]  ;;  %v271_v60 = vmul.f32 %v2307_v18, %v2307_v18  ;;  %v270_v61 = vmul.f32 %v2312_v19, %v2312_v19 }
  0x17   :  { %v2322_v22 = vld [vmem:[#allocation2] sm:$0xff]  ;;  %1009 = vrot.lane.b32.xlu2 %v449_v21, %s2175_s17  ;;  %v452_v26 = vld [vmem:[%s3768_s4 + $0x18] sm:$0xff]  ;;  %v2353_v27 = vld [vmem:[%s3764_s0 + $0x8] sm:$0xff]  ;;  %1949 = vmatpush.msra.mxu3 %v283_v37 }
  0x18   :  { %160 = vmatpush.msra.mxu0 %v2252_v4  ;;  %1936 = vmatpush.msra.mxu2 %v2252_v4  ;;  %v2331_v23 = vld [vmem:[%s3764_s0] sm:$0xff]  ;;  %v2358_v28 = vld [vmem:[%s3764_s0 + $0x48] sm:$0xff]  ;;  %v455_v29 = vld [vmem:[%s3768_s4 + $0x30] sm:$0xff]  ;;  %v269_v0 = vmul.f32 %v2322_v22, %v2322_v22 }
  0x19   :  { %v2336_v24 = vld [vmem:[%s3764_s0 + $0x40] sm:$0xff]  ;;  %v2369_v30 = vld [vmem:[%s3764_s0 + $0x10] sm:$0xff]  ;;  %v460_v32 = vld [vmem:[%s3768_s4 + $0x58] sm:$0xff]  ;;  %286 = vmatpush.msra.mxu1 %v283_v37  ;;  %1950 = vmatpush.msra.mxu3 %v282_v41 }
  0x1a   :  { %161 = vmatpush.msra.mxu0 %v2259_v6  ;;  %1937 = vmatpush.msra.mxu2 %v2259_v6  ;;  %v2374_v31 = vld [vmem:[%s3764_s0 + $0x50] sm:$0xff]  ;;  %v458_v33 = vld [vmem:[%s3768_s4 + $0x48] sm:$0xff]  ;;  %v2389_v34 = vld [vmem:[%s3764_s0 + $0x18] sm:$0xff] }
  0x1b   :  { %1019 = vrot.lane.b32.xlu1 %v454_v10, %s2175_s17  ;;  %1017 = vrot.lane.b32.xlu0 %v453_v14, %s2175_s17  ;;  %v2394_v35 = vld [vmem:[%s3764_s0 + $0x58] sm:$0xff]  ;;  %v461_v38 = vld [vmem:[%s3768_s4 + $0x60] sm:$0xff] }
  0x1c   :  { %162 = vmatpush.msra.mxu0 %v2264_v7  ;;  %1938 = vmatpush.msra.mxu2 %v2264_v7  ;;  %v462_v39 = vld [vmem:[%s3768_s4 + $0x68] sm:$0xff]  ;;  %v463_v40 = vld [vmem:[%s3768_s4 + $0x70] sm:$0xff]  ;;  %v2419_v42 = vld [vmem:[%s3764_s0 + $0x20] sm:$0xff] }
  0x1d   :  { %v2424_v43 = vld [vmem:[%s3764_s0 + $0x60] sm:$0xff]  ;;  %287 = vmatpush.msra.mxu1 %v282_v41  ;;  %1951 = vmatpush.msra.mxu3 %v281_v44  ;;  %v2439_v48 = vld [vmem:[%s3764_s0 + $0x28] sm:$0xff]  ;;  %v2459_v54 = vld [vmem:[%s3764_s0 + $0x30] sm:$0xff] }
  0x1e   :  { %163 = vmatpush.msra.mxu0 %v2271_v9  ;;  %1939 = vmatpush.msra.mxu2 %v2271_v9  ;;  %v2444_v49 = vld [vmem:[%s3764_s0 + $0x68] sm:$0xff]  ;;  %v2464_v55 = vld [vmem:[%s3764_s0 + $0x70] sm:$0xff]  ;;  %v2473_v57 = vld [vmem:[%s3764_s0 + $0x38] sm:$0xff] }
  0x1f   :  { %1015 = vrot.lane.b32.xlu2 %v452_v26, %s2175_s17  ;;  %288 = vmatpush.msra.mxu1 %v281_v44  ;;  %v2478_v58 = vld [vmem:[%s3764_s0 + $0x78] sm:$0xff]  ;;  %s1896_s0 = sshll.u32 %s3769_s5, 4  ;;  %s1897_s0 = int_to_ptr.hbm [resolvable:$true] %s1896_s0 }
  0x20   :  { %164 = vmatpush.msra.mxu0 %v2279_v11  ;;  %1940 = vmatpush.msra.mxu2 %v2279_v11  ;;  %v464_v63 = vld [vmem:[%s3768_s4 + $0x78] sm:$0xff]  ;;  %s2177_s4 = smov 96  }
  0x21   :  { %1952 = vmatpush.msra.mxu3 %v280_v45  ;;  %289 = vmatpush.msra.mxu1 %v280_v45 }
  0x22   :  { %165 = vmatpush.msra.mxu0 %v2283_v12  ;;  %1941 = vmatpush.msra.mxu2 %v2283_v12 }
  0x23   :  { %1025 = vrot.lane.b32.xlu1 %v457_v16, %s2175_s17  ;;  %1023 = vrot.lane.b32.xlu0 %v456_v20, %s2175_s17 }
  0x24   :  { %166 = vmatpush.msra.mxu0 %v2288_v13  ;;  %1942 = vmatpush.msra.mxu2 %v2288_v13 }
  0x25   :  { %1953 = vmatpush.msra.mxu3 %v279_v46  ;;  %290 = vmatpush.msra.mxu1 %v279_v46 }
  0x26   :  { %167 = vmatpush.msra.mxu0 %v2295_v15  ;;  %1943 = vmatpush.msra.mxu2 %v2295_v15 }
  0x27   :  { %1021 = vrot.lane.b32.xlu2 %v455_v29, %s2175_s17  ;;  %1954 = vmatpush.msra.mxu3 %v278_v47 }
  0x28   :  { %168 = vmatpush.msra.mxu0 %v2303_v17  ;;  %1944 = vmatpush.msra.mxu2 %v2303_v17 }
  0x29   :  { %291 = vmatpush.msra.mxu1 %v278_v47  ;;  %1955 = vmatpush.msra.mxu3 %v277_v50 }
  0x2a   :  { %169 = vmatpush.msra.mxu0 %v2307_v18  ;;  %1945 = vmatpush.msra.mxu2 %v2307_v18 }
  0x2b   :  { %1029 = vrot.lane.b32.xlu0 %v459_v25, %s2175_s17  ;;  %1031 = vrot.lane.b32.xlu1 %v460_v32, %s2175_s17 }
  0x2c   :  { %170 = vmatpush.msra.mxu0 %v2312_v19  ;;  %1946 = vmatpush.msra.mxu2 %v2312_v19 }
  0x2d   :  { %292 = vmatpush.msra.mxu1 %v277_v50  ;;  %1956 = vmatpush.msra.mxu3 %v276_v51 }
  0x2e   :  { %171 = vmatpush.msra.mxu0 %v2322_v22  ;;  %1947 = vmatpush.msra.mxu2 %v2322_v22 }
  0x2f   :  { %172 = vmatmul.f32.vlgmr.msra.gmra.mxu0 %v2331_v23  ;;  %196 = vmatmul.f32.vlgmr.msra.gmra.mxu2 %v2336_v24 }
  0x30   :  { %1027 = vrot.lane.b32.xlu2 %v458_v33, %s2175_s17  ;;  %293 = vmatpush.msra.mxu1 %v276_v51 }
  0x31   :  { %1957 = vmatpush.msra.mxu3 %v275_v52  ;;  %1977 = vset.pattern.permute.xlu2 %v2176_v62 }
  0x32   :  { %294 = vmatpush.msra.mxu1 %v275_v52 }
  0x33   :  { %1035 = vrot.lane.b32.xlu0 %v462_v39, %s2175_s17  ;;  %1037 = vrot.lane.b32.xlu1 %v463_v40, %s2175_s17 }
  0x34   :  { %1958 = vmatpush.msra.mxu3 %v274_v53  ;;  %295 = vmatpush.msra.mxu1 %v274_v53 }
  0x36   :  { %1959 = vmatpush.msra.mxu3 %v273_v56  ;;  %296 = vmatpush.msra.mxu1 %v273_v56 }
  0x37   :  { %175 = vmatmul.f32.gmra.mxu0 %v2353_v27  ;;  %199 = vmatmul.f32.gmra.mxu2 %v2358_v28 }
  0x38   :  { %1033 = vrot.lane.b32.xlu2 %v461_v38, %s2175_s17  ;;  %1960 = vmatpush.msra.mxu3 %v272_v59 }
  0x39   :  { %297 = vmatpush.msra.mxu1 %v272_v59 }
  0x3a   :  { %1961 = vmatpush.msra.mxu3 %v271_v60 }
  0x3b   :  { %298 = vmatpush.msra.mxu1 %v271_v60 }
  0x3c   :  { %1962 = vmatpush.msra.mxu3 %v270_v61 }
  0x3d   :  { %299 = vmatpush.msra.mxu1 %v270_v61 }
  0x3e   :  { %1963 = vmatpush.msra.mxu3 %v269_v0 }
  0x3f   :  { %178 = vmatmul.f32.gmra.mxu0 %v2369_v30  ;;  %202 = vmatmul.f32.gmra.mxu2 %v2374_v31 }
  0x40   :  { %1039 = vrot.lane.b32.xlu2 %v464_v63, %s2175_s17  ;;  %325 = vmatmul.f32.vlgmr.msra.gmra.mxu3 %v2336_v24 }
  0x41   :  { %300 = vmatpush.msra.mxu1 %v269_v0 }
  0x42   :  { %301 = vmatmul.f32.vlgmr.msra.gmra.mxu1 %v2331_v23 }
  0x47   :  { %181 = vmatmul.f32.gmra.mxu0 %v2389_v34  ;;  %205 = vmatmul.f32.gmra.mxu2 %v2394_v35 }
  0x48   :  { %328 = vmatmul.f32.gmra.mxu3 %v2358_v28 }
  0x4a   :  { %304 = vmatmul.f32.gmra.mxu1 %v2353_v27 }
  0x4f   :  { %184 = vmatmul.f32.gmra.mxu0 %v2419_v42  ;;  %208 = vmatmul.f32.gmra.mxu2 %v2424_v43 }
  0x50   :  { %331 = vmatmul.f32.gmra.mxu3 %v2374_v31 }
  0x52   :  { %307 = vmatmul.f32.gmra.mxu1 %v2369_v30 }
  0x57   :  { %187 = vmatmul.f32.gmra.mxu0 %v2439_v48  ;;  %211 = vmatmul.f32.gmra.mxu2 %v2444_v49 }
  0x58   :  { %334 = vmatmul.f32.gmra.mxu3 %v2394_v35 }
  0x5a   :  { %310 = vmatmul.f32.gmra.mxu1 %v2389_v34 }
  0x5f   :  { %190 = vmatmul.f32.gmra.mxu0 %v2459_v54  ;;  %214 = vmatmul.f32.gmra.mxu2 %v2464_v55 }
  0x60   :  { %337 = vmatmul.f32.gmra.mxu3 %v2424_v43 }
  0x62   :  { %313 = vmatmul.f32.gmra.mxu1 %v2419_v42 }
  0x67   :  { %193 = vmatmul.f32.gmra.mxu0 %v2473_v57  ;;  %217 = vmatmul.f32.gmra.mxu2 %v2478_v58 }
  0x68   :  { %340 = vmatmul.f32.gmra.mxu3 %v2444_v49 }
  0x6a   :  { %316 = vmatmul.f32.gmra.mxu1 %v2439_v48 }
  0x70   :  { %343 = vmatmul.f32.gmra.mxu3 %v2464_v55 }
  0x71   :  { %v1010_v3 = vpop.permute.xlu2 %1009 }
  0x72   :  { %319 = vmatmul.f32.gmra.mxu1 %v2459_v54 }
  0x78   :  { %346 = vmatmul.f32.gmra.mxu3 %v2478_v58 }
  0x79   :  { %v2537_v20 = vpop.permute.xlu2 %1015 }
  0x7a   :  { %322 = vmatmul.f32.gmra.mxu1 %v2473_v57 }
  0x81   :  { %v2556_v34 = vpop.permute.xlu2 %1021 }
  0x85   :  { %v1014_v1 = vpop.permute.xlu1 %1013  ;;  %v1012_v9 = vpop.permute.xlu0 %1011 }
  0x8a   :  { %v1028_v48 = vpop.permute.xlu2 %1027 }
  0x8d   :  { %v2504_v4 = vpop.permute.xlu1 %1019  ;;  %v2584_v55 = vpop.permute.xlu0 %1017 }
  0x95   :  { %v1026_v13 = vpop.permute.xlu1 %1025 }
  0xac   :  { %v2500_v2 = vpop.f32.mrf.mxu0 }
  0xad   :  { %835 = vperm.xlu1 %1975, %v2500_v2   ;;  %vm465_vm0 = vcmp.eq.f32.partialorder %v2500_v2, 0.0  ;;  %v1057_v5 = vadd.f32 %v1010_v3, %v2500_v2 }
  0xae   :  { %v481_v6 = vsel %vm465_vm0, 1.0, %v2500_v2 }
  0xaf   :  { %499 = vperm.xlu0 %1976, %v481_v6   ;;  %1978 = vrcp.f32 %v1057_v5  ;;  %v1084_v26 = vand.u32 2147483648, %v1057_v5  ;;  %vm1078_vm5 = vweird.f32 %v1057_v5  ;;  %v1082_v27 = vand.u32 2147483647, %v1057_v5 }
  0xb1   :  { %v1085_v31 = vor.u32 1.1754944e-38, %v1084_v26  ;;  %vm1083_vm8 = vcmp.eq.f32.partialorder %v1082_v27, 8.507059e+37 }
  0xb2   :  { %v2510_v7 = vpop.f32.mrf.mxu2 }
  0xb3   :  { %vm473_vm1 = vcmp.eq.f32.partialorder %v2510_v7, 0.0  ;;  %v2527_v16 = vadd.f32 %v1026_v13, %v2510_v7 }
  0xb4   :  { %v2512_v8 = vpop.f32.mrf.mxu0  ;;  %v489_v10 = vsel %vm473_vm1, 1.0, %v2510_v7 }
  0xb5   :  { %v1979_v11 = vpop.eup %1978  ;;  %539 = vperm.xlu2 %1977, %v489_v10   ;;  %v2519_v12 = vadd.f32 %v1012_v9, %v2512_v8  ;;  %3801 = vst [vmem:[#allocation15_spill] sm:$0xff] %v2527_v16  ;;  %1980 = vrcp.f32 %v2527_v16  ;;  %vm466_vm3 = vcmp.eq.f32.partialorder %v2512_v8, 0.0  ;;  %vm1198_vm11 = vweird.f32 %v2527_v16 }
  0xb6   :  { %v1074_v14 = vmul.f32 %v1979_v11, %v1057_v5  ;;  %vm1079_vm4 = vweird.f32 %v1979_v11  ;;  %v482_v28 = vsel %vm466_vm3, 1.0, %v2512_v8  ;;  %v1204_v42 = vand.u32 2147483648, %v2527_v16 }
  0xb7   :  { %1827 = vrot.lane.b32.xlu1 %v2519_v12, %s2177_s4  ;;  %1825 = vrot.lane.b32.xlu0 %v1057_v5, %s2177_s4  ;;  %vm1080_vm6 = vmor %vm1078_vm5, %vm1079_vm4  ;;  %1982 = vrcp.f32 %v2519_v12  ;;  %v1202_v44 = vand.u32 2147483647, %v2527_v16  ;;  %vm1093_vm0 = vweird.f32 %v2519_v12  ;;  %v1099_v61 = vand.u32 2147483648, %v2519_v12  ;;  %v2595_v5 = vpop.permute.xlu0 %1023 }
  0xb8   :  { %v1075_v17 = vsub.f32 1.0, %v1074_v14  ;;  %v1205_v50 = vor.u32 1.1754944e-38, %v1204_v42  ;;  %v1097_v62 = vand.u32 2147483647, %v2519_v12 }
  0xb9   :  { %vm1203_vm15 = vcmp.eq.f32.partialorder %v1202_v44, 8.507059e+37  ;;  %v1100_v3 = vor.u32 1.1754944e-38, %v1099_v61 }
  0xba   :  { %v2524_v15 = vpop.f32.mrf.mxu2  ;;  %v1076_v19 = vmul.f32 %v1979_v11, %v1075_v17  ;;  %vm1098_vm5 = vcmp.eq.f32.partialorder %v1097_v62, 8.507059e+37 }
  0xbb   :  { %v1981_v23 = vpop.eup %1980  ;;  %vm474_vm9 = vcmp.eq.f32.partialorder %v2524_v15, 0.0  ;;  %v2582_v52 = vadd.f32 %v1028_v48, %v2524_v15 }
  0xbc   :  { %v2531_v18 = vpop.f32.mrf.mxu0  ;;  %v1077_v22 = vadd.f32 %v1979_v11, %v1076_v19  ;;  %v1194_v29 = vmul.f32 %v1981_v23, %v2527_v16  ;;  %v490_v38 = vsel %vm474_vm9, 1.0, %v2524_v15  ;;  %vm1199_vm12 = vweird.f32 %v1981_v23 }
  0xbd   :  { %3802 = vst [vmem:[#allocation16_spill] sm:$0xff] %v2531_v18  ;;  %840 = vperm.xlu2 %1977, %v2512_v8   ;;  %vm467_vm2 = vcmp.eq.f32.partialorder %v2531_v18, 0.0  ;;  %v2542_v21 = vadd.f32 %v1014_v1, %v2531_v18  ;;  %v1983_v37 = vpop.eup %1982  ;;  %vm2572_vm13 = vmor %vm1198_vm11, %vm1199_vm12  ;;  %1984 = vrcp.f32 %v2582_v52  ;;  %v1219_v27 = vand.u32 2147483648, %v2582_v52 }
  0xbe   :  { %v483_v25 = vsel %vm467_vm2, 1.0, %v2531_v18  ;;  %v1081_v30 = vsel %vm1080_vm6, %v1979_v11, %v1077_v22  ;;  %v1195_v33 = vsub.f32 1.0, %v1194_v29  ;;  %v1089_v40 = vmul.f32 %v1983_v37, %v2519_v12  ;;  %3806 = vst [vmem:[#allocation18_spill] sm:$0xff] %v2582_v52 }
  0xbf   :  { %880 = vperm.xlu1 %1975, %v2524_v15   ;;  %875 = vperm.xlu0 %1976, %v2510_v7   ;;  %v1086_v32 = vsel %vm1083_vm8, %v1085_v31, %v1081_v30  ;;  %vm1094_vm1 = vweird.f32 %v1983_v37  ;;  %1986 = vrcp.f32 %v2542_v21  ;;  %v1217_v31 = vand.u32 2147483647, %v2582_v52 }
  0xc0   :  { %v1087_v36 = vmul.f32 %v1086_v32, %v2500_v2  ;;  %v1196_v39 = vmul.f32 %v1981_v23, %v1195_v33  ;;  %v1090_v49 = vsub.f32 1.0, %v1089_v40  ;;  %vm1095_vm2 = vmor %vm1093_vm0, %vm1094_vm1 }
  0xc2   :  { %v2546_v24 = vpop.f32.mrf.mxu2  ;;  %vm1313_vm10 = vcmp.ne.f32.partialorder %v1087_v36, %v1087_v36  ;;  %v1197_v43 = vadd.f32 %v1981_v23, %v1196_v39  ;;  %v1091_v54 = vmul.f32 %v1983_v37, %v1090_v49 }
  0xc3   :  { %vm475_vm7 = vcmp.eq.f32.partialorder %v2546_v24, 0.0  ;;  %v1329_v46 = vsel %vm1313_vm10, 0.0, %v1087_v36  ;;  %v1985_v1 = vpop.eup %1984  ;;  %vm1218_vm10 = vcmp.eq.f32.partialorder %v1217_v31, 8.507059e+37 }
  0xc4   :  { %v491_v35 = vsel %vm475_vm7, 1.0, %v2546_v24  ;;  %v2570_v45 = vpop.f32.mrf.mxu0  ;;  %v1201_v51 = vsel %vm2572_vm13, %v1981_v23, %v1197_v43  ;;  %v1345_v53 = vsub.f32 1.0, %v1329_v46  ;;  %v1092_v60 = vadd.f32 %v1983_v37, %v1091_v54  ;;  %v1030_v23 = vpop.permute.xlu0 %1029 }
  0xc5   :  { %1829 = vrot.lane.b32.xlu2 %v2542_v21, %s2177_s4  ;;  %3803 = vst [vmem:[#allocation17_spill] sm:$0xff] %v2570_v45  ;;  %v1206_v57 = vsel %vm1203_vm15, %v1205_v50, %v1201_v51  ;;  %vm468_vm4 = vcmp.eq.f32.partialorder %v2570_v45, 0.0  ;;  %v1209_v10 = vmul.f32 %v1985_v1, %v2582_v52  ;;  %v1987_v19 = vpop.eup %1986  ;;  %vm1213_vm7 = vweird.f32 %v2582_v52  ;;  %v1034_v51 = vpop.permute.xlu2 %1033 }
  0xc6   :  { %v1361_v58 = vmul.f32 %v1345_v53, %v1329_v46  ;;  %v1207_v59 = vmul.f32 %v1206_v57, %v2510_v7  ;;  %v1096_v0 = vsel %vm1095_vm2, %v1983_v37, %v1092_v60  ;;  %v484_v11 = vsel %vm468_vm4, 1.0, %v2570_v45 }
  0xc7   :  { %509 = vperm.xlu1 %1975, %v483_v25   ;;  %504 = vperm.xlu0 %1976, %v482_v28   ;;  %v1101_v9 = vsel %vm1098_vm5, %v1100_v3, %v1096_v0  ;;  %v1210_v14 = vsub.f32 1.0, %v1209_v10  ;;  %vm1214_vm8 = vweird.f32 %v1985_v1  ;;  %v1104_v26 = vmul.f32 %v1987_v19, %v2542_v21 }
  0xc8   :  { %vm1321_vm3 = vcmp.ne.f32.partialorder %v1207_v59, %v1207_v59  ;;  %v1102_v13 = vmul.f32 %v1101_v9, %v2512_v8  ;;  %v2607_v28 = vadd.f32 %v1030_v23, %v2546_v24  ;;  %vm1215_vm9 = vmor %vm1213_vm7, %vm1214_vm8  ;;  %vm1108_vm13 = vweird.f32 %v2542_v21 }
  0xc9   :  { %v1337_v6 = vsel %vm1321_vm3, 0.0, %v1207_v59  ;;  %v1211_v22 = vmul.f32 %v1985_v1, %v1210_v14  ;;  %v1105_v32 = vsub.f32 1.0, %v1104_v26  ;;  %v2625_v48 = vadd.f32 %v2537_v20, %v2570_v45 }
  0xca   :  { %v2566_v41 = vpop.f32.mrf.mxu2  ;;  %v1353_v12 = vsub.f32 1.0, %v1337_v6  ;;  %vm1314_vm6 = vcmp.ne.f32.partialorder %v1102_v13, %v1102_v13  ;;  %3807 = vst [vmem:[#allocation19_spill] sm:$0xff] %v2607_v28  ;;  %1988 = vrcp.f32 %v2607_v28  ;;  %v1114_v50 = vand.u32 2147483648, %v2542_v21 }
  0xcb   :  { %vm476_vm14 = vcmp.eq.f32.partialorder %v2566_v41, 0.0  ;;  %v1330_v25 = vsel %vm1314_vm6, 0.0, %v1102_v13  ;;  %v1212_v30 = vadd.f32 %v1985_v1, %v1211_v22  ;;  %v1106_v39 = vmul.f32 %v1987_v19, %v1105_v32  ;;  %3810 = vst [vmem:[#allocation22_spill] sm:$0xff] %v2625_v48 }
  0xcc   :  { %v492_v56 = vsel %vm476_vm14, 1.0, %v2566_v41  ;;  %v2592_v63 = vpop.f32.mrf.mxu0  ;;  %v1369_v17 = vmul.f32 %v1353_v12, %v1337_v6  ;;  %v1346_v29 = vsub.f32 1.0, %v1330_v25  ;;  %vm1109_vm14 = vweird.f32 %v1987_v19 }
  0xcd   :  { %885 = vperm.xlu2 %1977, %v2546_v24   ;;  %v1216_v37 = vsel %vm1215_vm9, %v1985_v1, %v1212_v30  ;;  %vm469_vm11 = vcmp.eq.f32.partialorder %v2592_v63, 0.0  ;;  %v1107_v47 = vadd.f32 %v1987_v19, %v1106_v39  ;;  %vm1110_vm15 = vmor %vm1108_vm13, %vm1109_vm14  ;;  %v2641_v62 = vpop.permute.xlu2 %1039  ;;  %v2649_v9 = vadd.f32 %v2584_v55, %v2592_v63 }
  0xce   :  { %v1362_v36 = vmul.f32 %v1346_v29, %v1330_v25  ;;  %v485_v43 = vsel %vm469_vm11, 1.0, %v2592_v63  ;;  %vm1228_vm2 = vweird.f32 %v2607_v28  ;;  %v1232_v13 = vand.u32 2147483647, %v2607_v28 }
  0xcf   :  { %549 = vperm.xlu1 %1975, %v491_v35   ;;  %544 = vperm.xlu0 %1976, %v490_v38   ;;  %v1220_v35 = vor.u32 1.1754944e-38, %v1219_v27  ;;  %v1032_v38 = vpop.permute.xlu1 %1031  ;;  %v1111_v20 = vsel %vm1110_vm15, %v1987_v19, %v1107_v47  ;;  %3812 = vst [vmem:[#allocation24_spill] sm:$0xff] %v2649_v9  ;;  %vm1123_vm11 = vweird.f32 %v2625_v48  ;;  %v1129_v47 = vand.u32 2147483648, %v2625_v48 }
  0xd0   :  { %v2615_v42 = vadd.f32 %v1032_v38, %v2566_v41  ;;  %v2620_v44 = vpop.eup %1988  ;;  %vm1233_vm7 = vcmp.eq.f32.partialorder %v1232_v13, 8.507059e+37 }
  0xd1   :  { %v1221_v40 = vsel %vm1218_vm10, %v1220_v35, %v1216_v37  ;;  %v1224_v54 = vmul.f32 %v2620_v44, %v2607_v28  ;;  %vm1229_vm3 = vweird.f32 %v2620_v44 }
  0xd2   :  { %v2610_v33 = vpop.f32.mrf.mxu2  ;;  %3809 = vst [vmem:[#allocation21_spill] sm:$0xff] %v2615_v42  ;;  %1990 = vrcp.f32 %v2615_v42  ;;  %vm2664_vm6 = vmor %vm1228_vm2, %vm1229_vm3  ;;  %vm1243_vm8 = vweird.f32 %v2615_v42  ;;  %vm1138_vm2 = vweird.f32 %v2649_v9  ;;  %vm1873_vm3 = vcmask 7168  }
  0xd3   :  { %3808 = vst [vmem:[#allocation20_spill] sm:$0xff] %v2610_v33  ;;  %vm477_vm12 = vcmp.eq.f32.partialorder %v2610_v33, 0.0  ;;  %1992 = vrcp.f32 %v2625_v48  ;;  %v1225_v60 = vsub.f32 1.0, %v1224_v54  ;;  %v2653_v10 = vadd.f32 %v1034_v51, %v2610_v33 }
  0xd4   :  { %v493_v49 = vsel %vm477_vm12, 1.0, %v2610_v33  ;;  %v2635_v57 = vpop.f32.mrf.mxu0  ;;  %1994 = vrcp.f32 %v2649_v9  ;;  %v1127_v54 = vand.u32 2147483647, %v2625_v48 }
  0xd5   :  { %1603 = vperm.xlu2 %1977, %v1329_v46   ;;  %v1222_v46 = vmul.f32 %v1221_v40, %v2524_v15  ;;  %3811 = vst [vmem:[#allocation23_spill] sm:$0xff] %v2635_v57  ;;  %v1226_v3 = vmul.f32 %v2620_v44, %v1225_v60  ;;  %vm470_vm4 = vcmp.eq.f32.partialorder %v2635_v57, 0.0  ;;  %1996 = vrcp.f32 %v2653_v10 }
  0xd6   :  { %3813 = vst [vmem:[#allocation25_spill] sm:$0xff] %v2653_v10  ;;  %v486_v22 = vsel %vm470_vm4, 1.0, %v2635_v57  ;;  %v2678_v31 = vadd.f32 %v2504_v4, %v2635_v57  ;;  %v1249_v4 = vand.u32 2147483648, %v2615_v42 }
  0xd7   :  { %850 = vperm.xlu1 %1975, %v2570_v45   ;;  %845 = vperm.xlu0 %1976, %v2531_v18   ;;  %vm1322_vm0 = vcmp.ne.f32.partialorder %v1222_v46, %v1222_v46  ;;  %v1227_v55 = vadd.f32 %v2620_v44, %v1226_v3 }
  0xd8   :  { %v2637_v61 = vpop.eup %1990  ;;  %3817 = vst [vmem:[#allocation27_spill] sm:$0xff] %v2678_v31  ;;  %1998 = vrcp.f32 %v2678_v31 }
  0xd9   :  { %vm1244_vm9 = vweird.f32 %v2637_v61 }
  0xda   :  { %v2669_v19 = vpop.f32.mrf.mxu2  ;;  %vm2699_vm13 = vmor %vm1243_vm8, %vm1244_vm9 }
  0xdb   :  { %3816 = vst [vmem:[#allocation26_spill] sm:$0xff] %v2669_v19  ;;  %vm478_vm10 = vcmp.eq.f32.partialorder %v2669_v19, 0.0 }
  0xdc   :  { %v2687_v38 = vpop.f32.mrf.mxu0  ;;  %v494_v51 = vsel %vm478_vm10, 1.0, %v2669_v19 }
  0xdd   :  { %554 = vperm.xlu2 %1977, %v492_v56   ;;  %v1115_v56 = vor.u32 1.1754944e-38, %v1114_v50  ;;  %3818 = vst [vmem:[#allocation28_spill] sm:$0xff] %v2687_v38  ;;  %vm471_vm9 = vcmp.eq.f32.partialorder %v2687_v38, 0.0 }
  0xdf   :  { %1507 = vperm.xlu1 %1975, %v1345_v53   ;;  %1411 = vperm.xlu0 %1976, %v1361_v58   ;;  %v1112_v53 = vand.u32 2147483647, %v2542_v21  ;;  %v1338_v58 = vsel %vm1322_vm0, 0.0, %v1222_v46  ;;  %v2639_v21 = vpop.eup %1992  ;;  %vm1128_vm0 = vcmp.eq.f32.partialorder %v1127_v54, 8.507059e+37 }
  0xe0   :  { %v1354_v0 = vsub.f32 1.0, %v1338_v58  ;;  %vm1124_vm12 = vweird.f32 %v2639_v21 }
  0xe1   :  { %vm1113_vm1 = vcmp.eq.f32.partialorder %v1112_v53, 8.507059e+37  ;;  %vm2711_vm14 = vmor %vm1123_vm11, %vm1124_vm12 }
  0xe2   :  { %v1116_v59 = vsel %vm1113_vm1, %v1115_v56, %v1111_v20  ;;  %v1370_v26 = vmul.f32 %v1354_v0, %v1338_v58  ;;  %v1262_v56 = vand.u32 2147483647, %v2653_v10 }
  0xe3   :  { %v1117_v1 = vmul.f32 %v1116_v59, %v2531_v18 }
  0xe5   :  { %855 = vperm.xlu2 %1977, %v2592_v63   ;;  %vm1315_vm5 = vcmp.ne.f32.partialorder %v1117_v1, %v1117_v1 }
  0xe6   :  { %v1331_v23 = vsel %vm1315_vm5, 0.0, %v1117_v1  ;;  %v1130_v1 = vor.u32 1.1754944e-38, %v1129_v47  ;;  %vm1258_vm5 = vweird.f32 %v2653_v10 }
  0xe7   :  { %514 = vperm.xlu1 %1975, %v484_v11   ;;  %890 = vperm.xlu0 %1976, %v2566_v41   ;;  %v1119_v11 = vmul.f32 %v2639_v21, %v2625_v48  ;;  %v1347_v35 = vsub.f32 1.0, %v1331_v23 }
  0xe9   :  { %v1363_v46 = vmul.f32 %v1347_v35, %v1331_v23 }
  0xed   :  { %1451 = vperm.xlu2 %1977, %v1369_v17   ;;  %v2732_v17 = vmul.f32 2.0, %v2500_v2 }
  0xef   :  { %1643 = vperm.xlu1 %1975, %v1337_v6   ;;  %1547 = vperm.xlu0 %1976, %v1353_v12   ;;  %v1239_v6 = vmul.f32 %v2637_v61, %v2615_v42  ;;  %v1234_v12 = vand.u32 2147483648, %v2607_v28 }
  0xf1   :  { %v1240_v14 = vsub.f32 1.0, %v1239_v6  ;;  %v1235_v27 = vor.u32 1.1754944e-38, %v1234_v12  ;;  %v2729_v12 = vadd.f32 %v2556_v34, %v2687_v38 }
  0xf3   :  { %v1241_v30 = vmul.f32 %v2637_v61, %v1240_v14  ;;  %3823 = vst [vmem:[#allocation29_spill] sm:$0xff] %v2729_v12  ;;  %2000 = vrcp.f32 %v2729_v12 }
  0xf5   :  { %1512 = vperm.xlu2 %1977, %v1346_v29   ;;  %v1231_v29 = vsel %vm2664_vm6, %v2620_v44, %v1227_v55  ;;  %v1247_v44 = vand.u32 2147483647, %v2615_v42  ;;  %v1036_v55 = vpop.permute.xlu0 %1035 }
  0xf6   :  { %v1236_v39 = vsel %vm1233_vm7, %v1235_v27, %v1231_v29  ;;  %v2743_v27 = vpop.f32.mrf.mxu0  ;;  %v2746_v29 = vadd.f32 %v1036_v55, %v2669_v19 }
  0xf7   :  { %1416 = vperm.xlu1 %1975, %v1362_v36   ;;  %1608 = vperm.xlu0 %1976, %v1330_v25   ;;  %v1120_v25 = vsub.f32 1.0, %v1119_v11  ;;  %v2682_v36 = vpop.eup %1994  ;;  %v1237_v20 = vmul.f32 %v1236_v39, %v2546_v24  ;;  %vm1248_vm15 = vcmp.eq.f32.partialorder %v1247_v44, 8.507059e+37  ;;  %v1144_v39 = vand.u32 2147483648, %v2649_v9 }
  0xf8   :  { %v2692_v40 = vpop.eup %1996  ;;  %v1134_v50 = vmul.f32 %v2682_v36, %v2649_v9  ;;  %3824 = vst [vmem:[#allocation30_spill] sm:$0xff] %v2746_v29  ;;  %vm1139_vm4 = vweird.f32 %v2682_v36  ;;  %2002 = vrcp.f32 %v2746_v29 }
  0xf9   :  { %v1121_v37 = vmul.f32 %v2639_v21, %v1120_v25  ;;  %v1254_v59 = vmul.f32 %v2692_v40, %v2653_v10  ;;  %v2722_v6 = vpop.eup %1998  ;;  %vm1323_vm1 = vcmp.ne.f32.partialorder %v1237_v20, %v1237_v20  ;;  %vm1259_vm6 = vweird.f32 %v2692_v40  ;;  %vm2771_vm8 = vmor %vm1138_vm2, %vm1139_vm4 }
  0xfa   :  { %v1135_v3 = vsub.f32 1.0, %v1134_v50  ;;  %vm2791_vm11 = vmor %vm1258_vm5, %vm1259_vm6  ;;  %vm1168_vm4 = vweird.f32 %v2729_v12 }
  0xfb   :  { %v1122_v53 = vadd.f32 %v2639_v21, %v1121_v37  ;;  %v1255_v14 = vsub.f32 1.0, %v1254_v59  ;;  %v1142_v37 = vand.u32 2147483647, %v2649_v9  ;;  %v1145_v59 = vor.u32 1.1754944e-38, %v1144_v39 }
  0xfc   :  { %v1136_v25 = vmul.f32 %v2682_v36, %v1135_v3 }
  0xfd   :  { %519 = vperm.xlu2 %1977, %v485_v43   ;;  %v1242_v43 = vadd.f32 %v2637_v61, %v1241_v30  ;;  %v1126_v11 = vsel %vm2711_vm14, %v2639_v21, %v1122_v53  ;;  %v1149_v21 = vmul.f32 %v2722_v6, %v2678_v31  ;;  %v1256_v30 = vmul.f32 %v2692_v40, %v1255_v14 }
  0xfe   :  { %vm1143_vm12 = vcmp.eq.f32.partialorder %v1142_v37, 8.507059e+37  ;;  %v2820_v37 = vmul.f32 2.0, %v2524_v15  ;;  %vm1154_vm14 = vweird.f32 %v2722_v6 }
  0xff   :  { %895 = vperm.xlu1 %1975, %v2610_v33   ;;  %559 = vperm.xlu0 %1976, %v493_v49   ;;  %v1246_v60 = vsel %vm2699_vm13, %v2637_v61, %v1242_v43  ;;  %v1038_v61 = vpop.permute.xlu1 %1037  ;;  %v2757_v43 = vpop.f32.mrf.mxu2  ;;  %v1150_v47 = vsub.f32 1.0, %v1149_v21  ;;  %vm2809_vm13 = vcmp.eq.f32.partialorder %v1262_v56, 8.507059e+37 }
 0x100   :  { %3825 = vst [vmem:[#allocation31_spill] sm:$0xff] %v2757_v43  ;;  %vm479_vm6 = vcmp.eq.f32.partialorder %v2757_v43, 0.0 }
 0x101   :  { %3834 = vst [vmem:[#allocation34_spill] sm:$0xff] %v2820_v37 }
 0x105   :  { %1648 = vperm.xlu2 %1977, %v1338_v58   ;;  %v1250_v58 = vor.u32 1.1754944e-38, %v1249_v4  ;;  %v2755_v4 = vmul.f32 2.0, %v2512_v8 }
 0x107   :  { %1552 = vperm.xlu1 %1975, %v1354_v0   ;;  %860 = vperm.xlu0 %1976, %v2635_v57   ;;  %v1251_v13 = vsel %vm1248_vm15, %v1250_v58, %v1246_v60  ;;  %v2784_v58 = vpop.eup %2000  ;;  %vm1153_vm15 = vweird.f32 %v2678_v31 }
 0x108   :  { %v1252_v34 = vmul.f32 %v1251_v13, %v2566_v41  ;;  %v487_v13 = vsel %vm471_vm9, 1.0, %v2687_v38  ;;  %vm1169_vm5 = vweird.f32 %v2784_v58 }
 0x10a   :  { %vm1324_vm7 = vcmp.ne.f32.partialorder %v1252_v34, %v1252_v34 }
 0x10d   :  { %524 = vperm.xlu2 %1977, %v486_v22   ;;  %v1131_v22 = vsel %vm1128_vm0, %v1130_v1, %v1126_v11  ;;  %v2795_v1 = vsel %vm1324_vm7, 0.0, %v1252_v34  ;;  %v1151_v11 = vmul.f32 %v2722_v6, %v1150_v47  ;;  %vm2852_vm0 = vmor %vm1153_vm15, %vm1154_vm14  ;;  %v1172_v34 = vand.u32 2147483647, %v2729_v12 }
 0x10f   :  { %v2680_v32 = vpop.permute.xlu2 %539  ;;  %1613 = vperm.xlu1 %1975, %v1331_v23   ;;  %1456 = vperm.xlu0 %1976, %v1370_v26   ;;  %v2735_v23 = vmul.f32 2.0, %v2510_v7  ;;  %v1339_v26 = vsel %vm1323_vm1, 0.0, %v1237_v20  ;;  %v1257_v20 = vadd.f32 %v2692_v40, %v1256_v30  ;;  %v3773_v30 = vsub.f32 1.0, %v2795_v1 }
 0x110   :  { %v1355_v49 = vsub.f32 1.0, %v1339_v26  ;;  %v1152_v39 = vadd.f32 %v2722_v6, %v1151_v11 }
 0x111   :  { %v1261_v21 = vsel %vm2791_vm11, %v2692_v40, %v1257_v20  ;;  %vm2919_vm11 = vmor %vm1168_vm4, %vm1169_vm5  ;;  %vm472_vm4 = vcmp.eq.f32.partialorder %v2743_v27, 0.0 }
 0x112   :  { %v1371_v55 = vmul.f32 %v1355_v49, %v1339_v26 }
 0x115   :  { %1421 = vperm.xlu2 %1977, %v1363_v46   ;;  %v1137_v46 = vadd.f32 %v2682_v36, %v1136_v25 }
 0x117   :  { %v2720_v0 = vpop.permute.xlu2 %840  ;;  %564 = vperm.xlu1 %1975, %v494_v51   ;;  %1517 = vperm.xlu0 %1976, %v1347_v35   ;;  %v1132_v35 = vmul.f32 %v1131_v22, %v2570_v45  ;;  %v1264_v51 = vand.u32 2147483648, %v2653_v10  ;;  %v1141_v3 = vsel %vm2771_vm8, %v2682_v36, %v1137_v46  ;;  %v2804_v22 = vadd.f32 %v2595_v5, %v2743_v27 }
 0x118   :  { %v1164_v36 = vmul.f32 %v2784_v58, %v2729_v12  ;;  %v1146_v5 = vsel %vm1143_vm12, %v1145_v59, %v1141_v3  ;;  %v2848_v3 = vmul.f32 2.0, %v2566_v41  ;;  %vm2887_vm8 = vcmp.eq.f32.partialorder %v1172_v34, 8.507059e+37 }
 0x119   :  { %vm1316_vm10 = vcmp.ne.f32.partialorder %v1132_v35, %v1132_v35  ;;  %v1265_v14 = vor.u32 1.1754944e-38, %v1264_v51  ;;  %3830 = vst [vmem:[#allocation32_spill] sm:$0xff] %v2804_v22  ;;  %v1147_v56 = vmul.f32 %v1146_v5, %v2592_v63 }
 0x11a   :  { %v1332_v25 = vsel %vm1316_vm10, 0.0, %v1132_v35  ;;  %v2822_v35 = vpop.eup %2002  ;;  %v1165_v59 = vsub.f32 1.0, %v1164_v36  ;;  %v2868_v36 = vpop.f32.mrf.mxu2 }
 0x11b   :  { %v1348_v46 = vsub.f32 1.0, %v1332_v25  ;;  %v1266_v47 = vsel %vm2809_vm13, %v1265_v14, %v1261_v21  ;;  %v1269_v60 = vmul.f32 %v2822_v35, %v2746_v29  ;;  %v1156_v21 = vsel %vm2852_vm0, %v2722_v6, %v1152_v39  ;;  %3837 = vst [vmem:[#allocation35_spill] sm:$0xff] %v2868_v36 }
 0x11c   :  { %v1267_v14 = vmul.f32 %v1266_v47, %v2610_v33  ;;  %vm1317_vm2 = vcmp.ne.f32.partialorder %v1147_v56, %v1147_v56  ;;  %v1166_v6 = vmul.f32 %v2784_v58, %v1165_v59  ;;  %vm1273_vm13 = vweird.f32 %v2746_v29 }
 0x11d   :  { %900 = vperm.xlu2 %1977, %v2669_v19   ;;  %v1364_v5 = vmul.f32 %v1348_v46, %v1332_v25  ;;  %vm1274_vm14 = vweird.f32 %v2822_v35 }
 0x11e   :  { %vm1325_vm7 = vcmp.ne.f32.partialorder %v1267_v14, %v1267_v14 }
 0x11f   :  { %v1830_v44 = vpop.permute.xlu2 %1829  ;;  %865 = vperm.xlu1 %1975, %v2687_v38   ;;  %1653 = vperm.xlu0 %1976, %v1339_v26   ;;  %v2777_v53 = vpop.permute.xlu1 %835  ;;  %v2816_v26 = vadd.f32 %v1038_v61, %v2757_v43  ;;  %v1157_v61 = vand.u32 2147483647, %v2678_v31  ;;  %v2931_v16 = vsel %vm1325_vm7, 0.0, %v1267_v14  ;;  %v2943_v14 = vadd.f32 %v2641_v62, %v2868_v36 }
 0x120   :  { %1876 = vst.msk [vmem:[%s3771_s7 + $0x10] sm:$0xff] %vm1873_vm3, %v1830_v44 }
 0x121   :  { %v2779_v54 = vpop.permute.xlu0 %499  ;;  %3833 = vst [vmem:[#allocation33_spill] sm:$0xff] %v2816_v26  ;;  %vm1158_vm1 = vcmp.eq.f32.partialorder %v1157_v61, 8.507059e+37 }
 0x122   :  { %2004 = vrcp.f32 %v2779_v54  ;;  %vm582_vm10 = vweird.f32 %v2779_v54 }
 0x123   :  { %2006 = vrcp.f32 %v2680_v32 }
 0x124   :  { %2008 = vrcp.f32 %v2804_v22 }
 0x125   :  { %1557 = vperm.xlu2 %1977, %v1355_v49   ;;  %v1159_v49 = vand.u32 2147483648, %v2678_v31  ;;  %2010 = vrcp.f32 %v2816_v26 }
 0x126   :  { %2012 = vrcp.f32 %v2943_v14 }
 0x127   :  { %v2825_v40 = vpop.permute.xlu2 %885  ;;  %1461 = vperm.xlu1 %1975, %v1371_v55   ;;  %529 = vperm.xlu0 %1976, %v487_v13   ;;  %v2857_v55 = vmul.f32 2.0, %v2546_v24 }
 0x128   :  { %v2830_v44 = vpop.eup %2004 }
 0x129   :  { %v578_v50 = vmul.f32 %v2830_v44, %v2779_v54  ;;  %v1828_v51 = vpop.permute.xlu1 %1827  ;;  %v1826_v20 = vpop.permute.xlu0 %1825  ;;  %vm583_vm9 = vweird.f32 %v2830_v44 }
 0x12a   :  { %1875 = vst.msk [vmem:[%s3771_s7 + $0x8] sm:$0xff] %vm1873_vm3, %v1828_v51  ;;  %v1160_v51 = vor.u32 1.1754944e-38, %v1159_v49  ;;  %v2875_v10 = vpop.eup %2006  ;;  %vm2925_vm12 = vmor %vm582_vm10, %vm583_vm9 }
 0x12b   :  { %v579_v13 = vsub.f32 1.0, %v578_v50  ;;  %1874 = vst.msk [vmem:[%s3771_s7] sm:$0xff] %vm1873_vm3, %v1826_v20  ;;  %v2873_v50 = vmul.f32 %v3773_v30, %v2795_v1  ;;  %v2880_v39 = vpop.eup %2008  ;;  %v1270_v20 = vsub.f32 1.0, %v1269_v60  ;;  %v1174_v30 = vand.u32 2147483648, %v2729_v12 }
 0x12c   :  { %v1161_v11 = vsel %vm1158_vm1, %v1160_v51, %v1156_v21  ;;  %v2891_v49 = vpop.eup %2010  ;;  %v698_v59 = vmul.f32 %v2875_v10, %v2680_v32  ;;  %v1167_v51 = vadd.f32 %v2784_v58, %v1166_v6  ;;  %v1179_v52 = vmul.f32 %v2880_v39, %v2804_v22  ;;  %vm2958_vm1 = vmor %vm1273_vm13, %vm1274_vm14 }
 0x12d   :  { %v580_v47 = vmul.f32 %v2830_v44, %v579_v13  ;;  %1618 = vperm.xlu2 %1977, %v1332_v25   ;;  %v2898_v13 = vsel %vm1317_vm2, 0.0, %v1147_v56  ;;  %v495_v56 = vsel %vm479_vm6, 1.0, %v2757_v43  ;;  %v1271_v28 = vmul.f32 %v2822_v35, %v1270_v20 }
 0x12e   :  { %v1284_v6 = vmul.f32 %v2891_v49, %v2816_v26  ;;  %v1175_v20 = vor.u32 1.1754944e-38, %v1174_v30  ;;  %v699_v9 = vsub.f32 1.0, %v698_v59  ;;  %v1171_v45 = vsel %vm2919_vm11, %v2784_v58, %v1167_v51 }
 0x12f   :  { %v2884_v61 = vpop.permute.xlu2 %1603  ;;  %1522 = vperm.xlu1 %1975, %v1348_v46   ;;  %1426 = vperm.xlu0 %1976, %v1364_v5   ;;  %v581_v60 = vadd.f32 %v2830_v44, %v580_v47  ;;  %v588_v46 = vand.u32 2147483648, %v2779_v54  ;;  %v1162_v5 = vmul.f32 %v1161_v11, %v2635_v57  ;;  %v586_v47 = vand.u32 2147483647, %v2779_v54 }
 0x130   :  { %v1180_v54 = vsub.f32 1.0, %v1179_v52  ;;  %v1272_v42 = vadd.f32 %v2822_v35, %v1271_v28  ;;  %v1279_v30 = vand.u32 2147483648, %v2746_v29  ;;  %v1277_v28 = vand.u32 2147483647, %v2746_v29  ;;  %v3017_v52 = vpop.f32.mrf.mxu3 }
 0x131   :  { %v2901_v21 = vpop.permute.xlu1 %880  ;;  %v2903_v34 = vpop.permute.xlu0 %875  ;;  %v585_v12 = vsel %vm2925_vm12, %v2830_v44, %v581_v60  ;;  %v589_v31 = vor.u32 1.1754944e-38, %v588_v46  ;;  %vm587_vm15 = vcmp.eq.f32.partialorder %v586_v47, 8.507059e+37  ;;  %vm1318_vm0 = vcmp.ne.f32.partialorder %v1162_v5, %v1162_v5 }
 0x132   :  { %v1285_v44 = vsub.f32 1.0, %v1284_v6  ;;  %vm1183_vm2 = vweird.f32 %v2804_v22  ;;  %v1189_v58 = vand.u32 2147483648, %v2804_v22  ;;  %v2974_v47 = vsel %vm1318_vm0, 0.0, %v1162_v5 }
 0x133   :  { %v2947_v59 = vsel %vm587_vm15, %v589_v31, %v585_v12  ;;  %v700_v31 = vmul.f32 %v2875_v10, %v699_v9  ;;  %v1176_v12 = vsel %vm2887_vm8, %v1175_v20, %v1171_v45  ;;  %v1276_v9 = vsel %vm2958_vm1, %v2822_v35, %v1272_v42 }
 0x134   :  { %v2980_v45 = vmul.f32 %v2947_v59, %v2500_v2  ;;  %v1280_v25 = vor.u32 1.1754944e-38, %v1279_v30  ;;  %v708_v11 = vand.u32 2147483648, %v2680_v32  ;;  %vm1278_vm5 = vcmp.eq.f32.partialorder %v1277_v28, 8.507059e+37 }
 0x135   :  { %569 = vperm.xlu2 %1977, %v495_v56   ;;  %v1181_v56 = vmul.f32 %v2880_v39, %v1180_v54  ;;  %v1286_v5 = vmul.f32 %v2891_v49, %v1285_v44  ;;  %v701_v6 = vadd.f32 %v2875_v10, %v700_v31  ;;  %vm702_vm6 = vweird.f32 %v2680_v32  ;;  %v3002_v44 = vpop.eup %2012 }
 0x136   :  { %vm703_vm7 = vweird.f32 %v2875_v10  ;;  %v488_v2 = vsel %vm472_vm4, 1.0, %v2743_v27  ;;  %v706_v54 = vand.u32 2147483647, %v2680_v32  ;;  %v1177_v35 = vmul.f32 %v1176_v12, %v2687_v38 }
 0x137   :  { %v2949_v60 = vpop.permute.xlu2 %554  ;;  %1658 = vperm.xlu1 %1975, %v2795_v1   ;;  %905 = vperm.xlu0 %1976, %v2757_v43   ;;  %vm1288_vm8 = vweird.f32 %v2816_v26  ;;  %vm1289_vm9 = vweird.f32 %v2891_v49  ;;  %v913_v20 = vmul.f32 %v2777_v53, %v2980_v45  ;;  %v1281_v42 = vsel %vm1278_vm5, %v1280_v25, %v1276_v9  ;;  %vm3004_vm11 = vmor %vm702_vm6, %vm703_vm7 }
 0x138   :  { %2014 = vrcp.f32 %v2949_v60  ;;  %v1294_v30 = vand.u32 2147483648, %v2816_v26  ;;  %vm1184_vm10 = vweird.f32 %v2880_v39  ;;  %v709_v62 = vor.u32 1.1754944e-38, %v708_v11  ;;  %vm3029_vm12 = vmor %vm1288_vm8, %vm1289_vm9 }
 0x139   :  { %v2968_v46 = vpop.permute.xlu1 %509  ;;  %v2970_v51 = vpop.permute.xlu0 %504  ;;  %v3848_v31 = vsub.f32 1.0, %v2795_v1  ;;  %v1287_v53 = vadd.f32 %v2891_v49, %v1286_v5  ;;  %v1292_v12 = vand.u32 2147483647, %v2816_v26  ;;  %v1187_v9 = vand.u32 2147483647, %v2804_v22  ;;  %vm3046_vm15 = vmor %vm1183_vm2, %vm1184_vm10 }
 0x13a   :  { %2016 = vrcp.f32 %v2970_v51  ;;  %v705_v11 = vsel %vm3004_vm11, %v2875_v10, %v701_v6  ;;  %v1182_v5 = vadd.f32 %v2880_v39, %v1181_v56  ;;  %vm707_vm13 = vcmp.eq.f32.partialorder %v706_v54, 8.507059e+37 }
 0x13b   :  { %vm1319_vm14 = vcmp.ne.f32.partialorder %v1177_v35, %v1177_v35  ;;  %v929_v54 = vsub.f32 %v2732_v17, %v913_v20  ;;  %v1295_v6 = vor.u32 1.1754944e-38, %v1294_v30  ;;  %v1291_v22 = vsel %vm3029_vm12, %v2891_v49, %v1287_v53 }
 0x13c   :  { %vm1293_vm0 = vcmp.eq.f32.partialorder %v1292_v12, 8.507059e+37  ;;  %v3063_v33 = vsel %vm1319_vm14, 0.0, %v1177_v35  ;;  %v1186_v57 = vsel %vm3046_vm15, %v2880_v39, %v1182_v5  ;;  %vm1188_vm1 = vcmp.eq.f32.partialorder %v1187_v9, 8.507059e+37  ;;  %v433_v5 = vld [vmem:[#allocation7] sm:$0xff] }
 0x13d   :  { %870 = vperm.xlu2 %1977, %v2743_v27   ;;  %v3854_v17 = vsub.f32 1.0, %v2931_v16  ;;  %v3076_v49 = vmul.f32 %v3002_v44, %v2943_v14  ;;  %v945_v39 = vmul.f32 %v929_v54, %v2980_v45  ;;  %v1296_v30 = vsel %vm1293_vm0, %v1295_v6, %v1291_v22 }
 0x13e   :  { %v3015_v25 = vpop.eup %2014  ;;  %v3855_v53 = vsub.f32 1.0, %v2974_v47  ;;  %vm480_vm4 = vcmp.eq.f32.partialorder %v2868_v36, 0.0  ;;  %v601_v6 = vand.u32 2147483647, %v2970_v51  ;;  %vm597_vm6 = vweird.f32 %v2970_v51 }
 0x13f   :  { %v3008_v28 = vpop.permute.xlu2 %855  ;;  %534 = vperm.xlu1 %1975, %v488_v2   ;;  %1562 = vperm.xlu0 %1976, %v3848_v31   ;;  %v3849_v2 = vsub.f32 1.0, %v2898_v13  ;;  %v1190_v31 = vor.u32 1.1754944e-38, %v1189_v58  ;;  %v3050_v58 = vpop.f32.mrf.mxu1  ;;  %v3072_v20 = vmul.f32 %v3854_v17, %v2931_v16  ;;  %v753_v9 = vand.u32 2147483648, %v2949_v60 }
 0x140   :  { %v3034_v29 = vpop.eup %2016  ;;  %v3090_v12 = vmul.f32 %v3855_v53, %v2974_v47  ;;  %v496_v53 = vsel %vm480_vm4, 1.0, %v2868_v36  ;;  %vm602_vm9 = vcmp.eq.f32.partialorder %v601_v6, 8.507059e+37  ;;  %vm748_vm10 = vweird.f32 %v3015_v25 }
 0x141   :  { %v1365_v38 = vmul.f32 %v3849_v2, %v2898_v13  ;;  %v3036_v32 = vpop.permute.xlu1 %549  ;;  %v3038_v10 = vpop.permute.xlu0 %544  ;;  %v1282_v2 = vmul.f32 %v1281_v42, %v2669_v19  ;;  %v593_v56 = vmul.f32 %v3034_v29, %v2970_v51  ;;  %v3056_v42 = vsel %vm707_vm13, %v709_v62, %v705_v11 }
 0x142   :  { %2018 = vrcp.f32 %v3036_v32  ;;  %v743_v19 = vmul.f32 %v3015_v25, %v2949_v60  ;;  %v3080_v35 = vmul.f32 %v3056_v42, %v2510_v7  ;;  %v3093_v7 = vsel %vm1188_vm1, %v1190_v31, %v1186_v57 }
 0x143   :  { %v594_v48 = vsub.f32 1.0, %v593_v56  ;;  %vm1326_vm2 = vcmp.ne.f32.partialorder %v1282_v2, %v1282_v2  ;;  %2020 = vrcp.f32 %v3038_v10  ;;  %vm598_vm5 = vweird.f32 %v3034_v29 }
 0x144   :  { %v3117_v31 = vmul.f32 %v1296_v30, %v2757_v43  ;;  %v961_v56 = vsub.f32 %v3050_v58, %v945_v39  ;;  %2022 = vrcp.f32 %v2968_v46  ;;  %vm3134_vm7 = vmor %vm597_vm6, %vm598_vm5  ;;  %v736_v58 = vand.u32 2147483647, %v3036_v32 }
 0x145   :  { %1466 = vperm.xlu2 %1977, %v2873_v50   ;;  %v595_v26 = vmul.f32 %v3034_v29, %v594_v48  ;;  %v744_v50 = vsub.f32 1.0, %v743_v19  ;;  %v3099_v48 = vmul.f32 %v2903_v34, %v3080_v35  ;;  %v3102_v19 = vpop.f32.mrf.mxu3  ;;  %vm732_vm11 = vweird.f32 %v3036_v32 }
 0x146   :  { %3856 = vst [vmem:[#allocation36_spill] sm:$0xff] %v3102_v19  ;;  %vm747_vm12 = vweird.f32 %v2949_v60  ;;  %vm737_vm15 = vcmp.eq.f32.partialorder %v736_v58, 8.507059e+37  ;;  %vm1327_vm1 = vcmp.ne.f32.partialorder %v3117_v31, %v3117_v31  ;;  %vm717_vm4 = vweird.f32 %v3038_v10 }
 0x147   :  { %v3084_v62 = vpop.permute.xlu2 %1451  ;;  %1431 = vperm.xlu1 %1975, %v1365_v38   ;;  %1623 = vperm.xlu0 %1976, %v2898_v13   ;;  %v3106_v38 = vsel %vm1326_vm2, 0.0, %v1282_v2  ;;  %v596_v22 = vadd.f32 %v3034_v29, %v595_v26  ;;  %v603_v2 = vand.u32 2147483648, %v2970_v51  ;;  %v745_v17 = vmul.f32 %v3015_v25, %v744_v50  ;;  %v3149_v43 = vpop.f32.mrf.mxu1  ;;  %vm3181_vm14 = vmor %vm747_vm12, %vm748_vm10 }
 0x148   :  { %v3095_v11 = vpop.eup %2018  ;;  %v937_v30 = vsub.f32 %v2735_v23, %v3099_v48  ;;  %v1377_v51 = vsub.f32 %v433_v5, %v2980_v45  ;;  %v738_v23 = vand.u32 2147483648, %v3036_v32  ;;  %v3861_v48 = vsub.f32 1.0, %v2898_v13 }
 0x149   :  { %v728_v57 = vmul.f32 %v3095_v11, %v3036_v32  ;;  %v3112_v1 = vpop.permute.xlu1 %850  ;;  %v3114_v34 = vpop.permute.xlu0 %845  ;;  %v600_v39 = vsel %vm3134_vm7, %v3034_v29, %v596_v22  ;;  %vm733_vm8 = vweird.f32 %v3095_v11  ;;  %v604_v54 = vor.u32 1.1754944e-38, %v603_v2  ;;  %v417_v22 = vld [vmem:[#allocation5] sm:$0xff] }
 0x14a   :  { %3857 = vst [vmem:[#allocation37_spill] sm:$0xff] %v3112_v1  ;;  %v977_v1 = vmul.f32 %v961_v56, %v2947_v59  ;;  %v746_v29 = vadd.f32 %v3015_v25, %v745_v17  ;;  %v1761_v2 = vmul.f32 %v2884_v61, %v2980_v45  ;;  %v1393_v56 = vmul.f32 %v1377_v51, %v1377_v51  ;;  %vm3167_vm13 = vmor %vm732_vm11, %vm733_vm8 }
 0x14b   :  { %3858 = vst [vmem:[#allocation38_spill] sm:$0xff] %v3114_v34  ;;  %v729_v26 = vsub.f32 1.0, %v728_v57  ;;  %v3147_v57 = vpop.eup %2020  ;;  %v3163_v59 = vsel %vm602_vm9, %v604_v54, %v600_v39  ;;  %v751_v17 = vand.u32 2147483647, %v2949_v60  ;;  %v754_v34 = vor.u32 1.1754944e-38, %v753_v9 }
 0x14c   :  { %v3177_v54 = vpop.eup %2022  ;;  %v1358_v9 = vsub.f32 1.0, %v3106_v38  ;;  %vm718_vm2 = vweird.f32 %v3147_v57  ;;  %vm1303_vm6 = vweird.f32 %v2943_v14  ;;  %vm1304_vm7 = vweird.f32 %v3002_v44 }
 0x14d   :  { %v730_v50 = vmul.f32 %v3095_v11, %v729_v26  ;;  %1527 = vperm.xlu2 %1977, %v3861_v48   ;;  %v739_v26 = vor.u32 1.1754944e-38, %v738_v23  ;;  %v3185_v39 = vpop.f32.mrf.mxu3  ;;  %v1681_v23 = vmul.f32 %v2884_v61, %v977_v1  ;;  %vm752_vm0 = vcmp.eq.f32.partialorder %v751_v17, 8.507059e+37  ;;  %vm3290_vm5 = vmor %vm717_vm4, %vm718_vm2 }
 0x14e   :  { %vm612_vm11 = vweird.f32 %v2968_v46 }
 0x14f   :  { %v3156_v13 = vpop.permute.xlu2 %1512  ;;  %910 = vperm.xlu1 %1975, %v2868_v36   ;;  %574 = vperm.xlu0 %1976, %v496_v53   ;;  %v731_v6 = vadd.f32 %v3095_v11, %v730_v50  ;;  %v713_v53 = vmul.f32 %v3147_v57, %v3038_v10 }
 0x151   :  { %v1508_v50 = vpop.permute.xlu1 %1507  ;;  %v1412_v48 = vpop.permute.xlu0 %1411  ;;  %v735_v45 = vsel %vm3167_vm13, %v3095_v11, %v731_v6  ;;  %v750_v11 = vsel %vm3181_vm14, %v3015_v25, %v746_v29  ;;  %v3193_v6 = vmul.f32 %v3163_v59, %v2512_v8  ;;  %v714_v61 = vsub.f32 1.0, %v713_v53 }
 0x152   :  { %v1585_v60 = vmul.f32 %v1508_v50, %v417_v22  ;;  %v1745_v19 = vmul.f32 %v1508_v50, %v433_v5  ;;  %v3195_v32 = vsel %vm737_vm15, %v739_v26, %v735_v45  ;;  %v1489_v37 = vmul.f32 %v1412_v48, %v1393_v56  ;;  %v3208_v5 = vld [vmem:[#allocation7 + $0x40] sm:$0xff] }
 0x153   :  { %v3199_v22 = vmul.f32 %v3195_v32, %v2546_v24  ;;  %v953_v25 = vmul.f32 %v937_v30, %v3080_v35  ;;  %v3204_v1 = vsel %vm752_vm0, %v754_v34, %v750_v11  ;;  %v3866_v24 = vsub.f32 1.0, %v2931_v16 }
 0x154   :  { %v1697_v36 = vadd.f32 %v1681_v23, %v1585_v60  ;;  %v1777_v18 = vadd.f32 %v1761_v2, %v1745_v19  ;;  %v3867_v29 = vsub.f32 1.0, %v3063_v33  ;;  %v3237_v34 = vmul.f32 %v3093_v7, %v2743_v27 }
 0x155   :  { %1663 = vperm.xlu2 %1977, %v2931_v16   ;;  %v923_v19 = vmul.f32 %v2825_v40, %v3199_v22  ;;  %v3226_v40 = vmul.f32 2.0, %v2592_v63  ;;  %v608_v16 = vmul.f32 %v3177_v54, %v2968_v46  ;;  %v3244_v56 = vmul.f32 %v3204_v1, %v2566_v41  ;;  %v335_v23 = vpop.f32.mrf.mxu3 }
 0x156   :  { %1793 = vst [vmem:[#allocation9] sm:$0xff] %v1777_v18  ;;  %v1713_v8 = vadd.f32 %v1697_v36, %v1489_v37  ;;  %v3218_v30 = vmul.f32 %v3867_v29, %v3063_v33  ;;  %v3868_v18 = vsub.f32 1.0, %v3076_v49  ;;  %v3230_v36 = vpop.f32.mrf.mxu1  ;;  %v715_v49 = vmul.f32 %v3147_v57, %v714_v61 }
 0x157   :  { %v3210_v58 = vpop.permute.xlu2 %519  ;;  %1567 = vperm.xlu1 %1975, %v3866_v24   ;;  %1471 = vperm.xlu0 %1976, %v3072_v20   ;;  %v914_v20 = vmul.f32 %v2720_v0, %v3193_v6  ;;  %v3249_v26 = vmul.f32 %v1358_v9, %v3106_v38  ;;  %v939_v0 = vsub.f32 %v2857_v55, %v923_v19  ;;  %v3259_v50 = vsel %vm1327_vm1, 0.0, %v3117_v31  ;;  %vm3364_vm1 = vmor %vm1303_vm6, %vm1304_vm7 }
 0x158   :  { %v1301_v37 = vmul.f32 %v3002_v44, %v3868_v18  ;;  %1729 = vst [vmem:[#allocation8] sm:$0xff] %v1713_v8  ;;  %2024 = vrcp.f32 %v3210_v58  ;;  %v1385_v7 = vsub.f32 %v3208_v5, %v3080_v35  ;;  %v969_v53 = vsub.f32 %v3017_v52, %v953_v25 }
 0x159   :  { %v3240_v2 = vpop.permute.xlu1 %514  ;;  %v891_v17 = vpop.permute.xlu0 %890  ;;  %v1307_v45 = vand.u32 2147483647, %v2943_v14  ;;  %v1309_v55 = vand.u32 2147483648, %v2943_v14  ;;  %v609_v51 = vsub.f32 1.0, %v608_v16  ;;  %v723_v60 = vand.u32 2147483648, %v3038_v10 }
 0x15a   :  { %v924_v41 = vmul.f32 %v891_v17, %v3244_v56  ;;  %v3263_v48 = vadd.f32 %v3002_v44, %v1301_v37  ;;  %v930_v52 = vsub.f32 %v2755_v4, %v914_v20  ;;  %v955_v11 = vmul.f32 %v939_v0, %v3199_v22  ;;  %v425_v37 = vld [vmem:[#allocation5 + $0x40] sm:$0xff] }
 0x15b   :  { %v716_v61 = vadd.f32 %v3147_v57, %v715_v49  ;;  %v721_v25 = vand.u32 2147483647, %v3038_v10  ;;  %v1401_v19 = vmul.f32 %v1385_v7, %v1385_v7  ;;  %v985_v24 = vmul.f32 %v969_v53, %v3056_v42 }
 0x15c   :  { %v940_v31 = vsub.f32 %v2848_v3, %v924_v41  ;;  %v971_v29 = vsub.f32 %v3185_v39, %v955_v11  ;;  %v610_v16 = vmul.f32 %v3177_v54, %v609_v51  ;;  %v724_v20 = vor.u32 1.1754944e-38, %v723_v60  ;;  %v434_v11 = vld [vmem:[#allocation7 + $0x8] sm:$0xff] }
 0x15d   :  { %1436 = vperm.xlu2 %1977, %v3090_v12   ;;  %v3869_v12 = vsub.f32 1.0, %v2974_v47  ;;  %v946_v39 = vmul.f32 %v930_v52, %v3193_v6  ;;  %v648_v17 = vand.u32 2147483648, %v3210_v58  ;;  %v720_v0 = vsel %vm3290_vm5, %v3147_v57, %v716_v61 }
 0x15e   :  { %v2025_v8 = vpop.eup %2024  ;;  %v956_v3 = vmul.f32 %v940_v31, %v3244_v56  ;;  %v3286_v42 = vpop.f32.mrf.mxu1  ;;  %vm3304_vm8 = vcmp.eq.f32.partialorder %v721_v25, 8.507059e+37  ;;  %v1497_v57 = vmul.f32 %v3084_v62, %v1401_v19  ;;  %vm642_vm10 = vweird.f32 %v3210_v58  ;;  %v418_v62 = vld [vmem:[#allocation5 + $0x8] sm:$0xff] }
 0x15f   :  { %v638_v4 = vmul.f32 %v2025_v8, %v3210_v58  ;;  %v3280_v18 = vpop.permute.xlu2 %1648  ;;  %1628 = vperm.xlu1 %1975, %v2974_v47   ;;  %1532 = vperm.xlu0 %1976, %v3869_v12   ;;  %v3298_v47 = vmul.f32 %v971_v29, %v3195_v32  ;;  %vm643_vm9 = vweird.f32 %v2025_v8  ;;  %v646_v29 = vand.u32 2147483647, %v3210_v58 }
 0x160   :  { %v962_v12 = vsub.f32 %v3149_v43, %v946_v39  ;;  %vm644_vm12 = vmor %vm642_vm10, %vm643_vm9  ;;  %v1378_v43 = vsub.f32 %v434_v11, %v3193_v6  ;;  %vm1320_vm13 = vcmp.ne.f32.partialorder %v3237_v34, %v3237_v34  ;;  %v611_v58 = vadd.f32 %v3177_v54, %v610_v16 }
 0x161   :  { %v639_v49 = vsub.f32 1.0, %v638_v4  ;;  %v1644_v53 = vpop.permute.xlu1 %1643  ;;  %v1548_v41 = vpop.permute.xlu0 %1547  ;;  %v972_v4 = vsub.f32 %v335_v23, %v956_v3  ;;  %v649_v23 = vor.u32 1.1754944e-38, %v648_v17  ;;  %vm613_vm14 = vweird.f32 %v3177_v54 }
 0x162   :  { %v1689_v51 = vmul.f32 %v1644_v53, %v985_v24  ;;  %v1769_v60 = vmul.f32 %v1644_v53, %v3080_v35  ;;  %v1593_v52 = vmul.f32 %v1548_v41, %v425_v37  ;;  %v1753_v32 = vmul.f32 %v1548_v41, %v3208_v5  ;;  %vm3349_vm0 = vmor %vm612_vm11, %vm613_vm14 }
 0x163   :  { %v640_v31 = vmul.f32 %v2025_v8, %v639_v49  ;;  %v3316_v35 = vsel %vm3304_vm8, %v724_v20, %v720_v0  ;;  %v3321_v5 = vmul.f32 %v972_v4, %v3204_v1  ;;  %vm647_vm15 = vcmp.eq.f32.partialorder %v646_v29, 8.507059e+37 }
 0x164   :  { %v1705_v61 = vadd.f32 %v1689_v51, %v1593_v52  ;;  %v1785_v25 = vadd.f32 %v1769_v60, %v1753_v32  ;;  %v3335_v3 = vmul.f32 %v3316_v35, %v2524_v15  ;;  %v978_v37 = vmul.f32 %v962_v12, %v3163_v59 }
 0x165   :  { %v641_v10 = vadd.f32 %v2025_v8, %v640_v31  ;;  %1572 = vperm.xlu2 %1977, %v1358_v9   ;;  %v616_v16 = vand.u32 2147483647, %v2968_v46  ;;  %v1586_v20 = vmul.f32 %v3156_v13, %v418_v62  ;;  %v1746_v59 = vmul.f32 %v3156_v13, %v434_v11 }
 0x166   :  { %v1721_v19 = vadd.f32 %v1705_v61, %v1497_v57  ;;  %1801 = vst [vmem:[#allocation9 + $0x40] sm:$0xff] %v1785_v25  ;;  %v314_v49 = vpop.f32.mrf.mxu1  ;;  %v1394_v17 = vmul.f32 %v1378_v43, %v1378_v43  ;;  %v1359_v53 = vsub.f32 1.0, %v3259_v50  ;;  %v1310_v52 = vor.u32 1.1754944e-38, %v1309_v55  ;;  %v3879_v57 = vld [vmem:[#allocation34_spill] sm:$0xff] }
 0x167   :  { %v645_v9 = vsel %vm644_vm12, %v2025_v8, %v641_v10  ;;  %v3329_v1 = vpop.permute.xlu2 %524  ;;  %1476 = vperm.xlu1 %1975, %v3249_v26   ;;  %1668 = vperm.xlu0 %1976, %v3106_v38   ;;  %v618_v8 = vand.u32 2147483648, %v2968_v46  ;;  %vm617_vm2 = vcmp.eq.f32.partialorder %v616_v16, 8.507059e+37  ;;  %vm1308_vm4 = vcmp.eq.f32.partialorder %v1307_v45, 8.507059e+37  ;;  %v3880_v10 = vld [vmem:[#allocation16_spill] sm:$0xff]  ;;  %v3881_v16 = vld [vmem:[#allocation35_spill] sm:$0xff] }
 0x168   :  { %v650_v24 = vsel %vm647_vm15, %v649_v23, %v645_v9  ;;  %1737 = vst [vmem:[#allocation8 + $0x40] sm:$0xff] %v1721_v19  ;;  %2026 = vrcp.f32 %v3329_v1  ;;  %v663_v23 = vand.u32 2147483648, %v3329_v1  ;;  %v1375_v19 = vmul.f32 %v1359_v53, %v3259_v50 }
 0x169   :  { %v1417_v39 = vpop.permute.xlu1 %1416  ;;  %v1609_v26 = vpop.permute.xlu0 %1608  ;;  %v3343_v38 = vmul.f32 %v650_v24, %v2592_v63  ;;  %v615_v63 = vsel %vm3349_vm0, %v3177_v54, %v611_v58  ;;  %2028 = vrcp.f32 %v3240_v2  ;;  %v619_v60 = vor.u32 1.1754944e-38, %v618_v8 }
 0x16a   :  { %v1682_v0 = vmul.f32 %v1609_v26, %v978_v37  ;;  %v1762_v7 = vmul.f32 %v1609_v26, %v3193_v6  ;;  %v922_v6 = vmul.f32 %v2901_v21, %v3335_v3  ;;  %v1490_v41 = vmul.f32 %v1417_v39, %v1394_v17  ;;  %v3882_v26 = vld [vmem:[#allocation38_spill] sm:$0xff]  ;;  %v442_v17 = vld [vmem:[#allocation7 + $0x48] sm:$0xff] }
 0x16b   :  { %v917_v13 = vmul.f32 %v3008_v28, %v3343_v38  ;;  %v1306_v21 = vsel %vm3364_vm1, %v3002_v44, %v3263_v48  ;;  %v3382_v28 = vsel %vm617_vm2, %v619_v60, %v615_v63  ;;  %v661_v58 = vand.u32 2147483647, %v3329_v1  ;;  %v3883_v63 = vld [vmem:[#allocation36_spill] sm:$0xff] }
 0x16c   :  { %v1698_v54 = vadd.f32 %v1682_v0, %v1586_v20  ;;  %v1778_v51 = vadd.f32 %v1762_v7, %v1746_v59  ;;  %v938_v61 = vsub.f32 %v3879_v57, %v922_v6  ;;  %v1311_v12 = vsel %vm1308_vm4, %v1310_v52, %v1306_v21 }
 0x16d   :  { %1633 = vperm.xlu2 %1977, %v3063_v33   ;;  %v933_v32 = vsub.f32 %v3226_v40, %v917_v13  ;;  %v3878_v40 = vsub.f32 1.0, %v3063_v33  ;;  %v3402_v33 = vsel %vm1320_vm13, 0.0, %v3237_v34  ;;  %v3406_v62 = vmul.f32 %v3382_v28, %v3880_v10 }
 0x16e   :  { %v2027_v11 = vpop.eup %2026  ;;  %v1714_v31 = vadd.f32 %v1698_v54, %v1490_v41  ;;  %1794 = vst [vmem:[#allocation9 + $0x8] sm:$0xff] %v1778_v51  ;;  %v954_v37 = vmul.f32 %v938_v61, %v3335_v3  ;;  %v1312_v8 = vmul.f32 %v1311_v12, %v3881_v16  ;;  %vm657_vm6 = vweird.f32 %v3329_v1  ;;  %v317_v13 = vpop.f32.mrf.mxu1  ;;  %v3884_v51 = vld [vmem:[#allocation23_spill] sm:$0xff] }
 0x16f   :  { %v653_v29 = vmul.f32 %v2027_v11, %v3329_v1  ;;  %v3385_v4 = vpop.permute.xlu2 %1421  ;;  %1537 = vperm.xlu1 %1975, %v3878_v40   ;;  %1441 = vperm.xlu0 %1976, %v3218_v30   ;;  %v949_v55 = vmul.f32 %v933_v32, %v3343_v38  ;;  %v3392_v44 = vpop.eup %2028  ;;  %vm658_vm5 = vweird.f32 %v2027_v11  ;;  %v1352_v39 = vsub.f32 1.0, %v3402_v33  ;;  %v426_v40 = vld [vmem:[#allocation5 + $0x48] sm:$0xff] }
 0x170   :  { %1730 = vst [vmem:[#allocation8 + $0x8] sm:$0xff] %v1714_v31  ;;  %v623_v34 = vmul.f32 %v3392_v44, %v3240_v2  ;;  %v915_v15 = vmul.f32 %v3882_v26, %v3406_v62  ;;  %vm659_vm7 = vmor %vm657_vm6, %vm658_vm5  ;;  %v664_v59 = vor.u32 1.1754944e-38, %v663_v23  ;;  %vm662_vm8 = vcmp.eq.f32.partialorder %v661_v58, 8.507059e+37 }
 0x171   :  { %v654_v48 = vsub.f32 1.0, %v653_v29  ;;  %v3394_v45 = vpop.permute.xlu1 %895  ;;  %v3396_v25 = vpop.permute.xlu0 %559  ;;  %v965_v30 = vsub.f32 %v314_v49, %v949_v55  ;;  %v970_v46 = vsub.f32 %v3883_v63, %v954_v37  ;;  %vm1328_vm9 = vcmp.ne.f32.partialorder %v1312_v8, %v1312_v8 }
 0x172   :  { %2030 = vrcp.f32 %v3396_v25  ;;  %v624_v1 = vsub.f32 1.0, %v623_v34  ;;  %v822_v52 = vmul.f32 2.0, %v3884_v51  ;;  %v1386_v21 = vsub.f32 %v442_v17, %v3335_v3 }
 0x173   :  { %v655_v43 = vmul.f32 %v2027_v11, %v654_v48  ;;  %v3412_v9 = vmul.f32 %v965_v30, %v650_v24  ;;  %v819_v24 = vmul.f32 2.0, %v3880_v10  ;;  %v3437_v57 = vsel %vm1328_vm9, 0.0, %v1312_v8 }
 0x174   :  { %v625_v61 = vmul.f32 %v3392_v44, %v624_v1  ;;  %v986_v48 = vmul.f32 %v970_v46, %v3316_v35  ;;  %v768_v12 = vand.u32 2147483648, %v3396_v25  ;;  %v1402_v58 = vmul.f32 %v1386_v21, %v1386_v21  ;;  %v3887_v46 = vld [vmem:[#allocation20_spill] sm:$0xff] }
 0x175   :  { %v656_v20 = vadd.f32 %v2027_v11, %v655_v43  ;;  %1481 = vperm.xlu2 %1977, %v1375_v19   ;;  %v766_v19 = vand.u32 2147483647, %v3396_v25  ;;  %vm627_vm11 = vweird.f32 %v3240_v2  ;;  %vm762_vm12 = vweird.f32 %v3396_v25 }
 0x176   :  { %v1690_v8 = vmul.f32 %v3280_v18, %v986_v48  ;;  %vm628_vm13 = vweird.f32 %v3392_v44  ;;  %v633_v26 = vand.u32 2147483648, %v3240_v2 }
 0x177   :  { %v3423_v49 = vpop.permute.xlu2 %900  ;;  %1673 = vperm.xlu1 %1975, %v3259_v50   ;;  %1577 = vperm.xlu0 %1976, %v1359_v53   ;;  %v660_v0 = vsel %vm659_vm7, %v2027_v11, %v656_v20  ;;  %v1368_v50 = vmul.f32 %v1352_v39, %v3402_v33  ;;  %v931_v53 = vsub.f32 %v819_v24, %v915_v15  ;;  %v769_v20 = vor.u32 1.1754944e-38, %v768_v12  ;;  %vm3458_vm0 = vmor %vm627_vm11, %vm628_vm13  ;;  %v3889_v12 = vld [vmem:[#allocation17_spill] sm:$0xff] }
 0x178   :  { %v2031_v7 = vpop.eup %2030  ;;  %v665_v6 = vsel %vm662_vm8, %v664_v59, %v660_v0  ;;  %v1770_v11 = vmul.f32 %v3280_v18, %v3335_v3  ;;  %vm767_vm15 = vcmp.eq.f32.partialorder %v766_v19, 8.507059e+37  ;;  %v435_v18 = vld [vmem:[#allocation7 + $0x10] sm:$0xff] }
 0x179   :  { %v758_v41 = vmul.f32 %v2031_v7, %v3396_v25  ;;  %v1553_v54 = vpop.permute.xlu1 %1552  ;;  %v3429_v60 = vmul.f32 %v665_v6, %v3884_v51  ;;  %v861_v32 = vpop.permute.xlu0 %860  ;;  %vm763_vm10 = vweird.f32 %v2031_v7  ;;  %v947_v3 = vmul.f32 %v931_v53, %v3406_v62 }
 0x17a   :  { %v1754_v31 = vmul.f32 %v1553_v54, %v442_v17  ;;  %v1594_v43 = vmul.f32 %v1553_v54, %v426_v40  ;;  %vm764_vm14 = vmor %vm762_vm12, %vm763_vm10 }
 0x17b   :  { %v759_v29 = vsub.f32 1.0, %v758_v41  ;;  %v918_v55 = vmul.f32 %v861_v32, %v3429_v60  ;;  %v634_v32 = vor.u32 1.1754944e-38, %v633_v26 }
 0x17c   :  { %v1786_v30 = vadd.f32 %v1770_v11, %v1754_v31  ;;  %v1706_v17 = vadd.f32 %v1690_v8, %v1594_v43 }
 0x17d   :  { %v760_v10 = vmul.f32 %v2031_v7, %v759_v29  ;;  %v934_v23 = vsub.f32 %v822_v52, %v918_v55  ;;  %1542 = vperm.xlu2 %1977, %v1352_v39   ;;  %v626_v39 = vadd.f32 %v3392_v44, %v625_v61  ;;  %v419_v29 = vld [vmem:[#allocation5 + $0x10] sm:$0xff] }
 0x17e   :  { %1802 = vst [vmem:[#allocation9 + $0x48] sm:$0xff] %v1786_v30 }
 0x17f   :  { %v950_v35 = vmul.f32 %v934_v23, %v3429_v60  ;;  %v3447_v34 = vpop.permute.xlu2 %1557  ;;  %1446 = vperm.xlu1 %1975, %v1368_v50   ;;  %1638 = vperm.xlu0 %1976, %v3402_v33   ;;  %v761_v37 = vadd.f32 %v2031_v7, %v760_v10  ;;  %v631_v33 = vand.u32 2147483647, %v3240_v2  ;;  %v630_v52 = vsel %vm3458_vm0, %v3392_v44, %v626_v39  ;;  %v3888_v44 = vld [vmem:[#allocation22_spill] sm:$0xff] }
 0x180   :  { %v1360_v2 = vsub.f32 1.0, %v3437_v57  ;;  %v829_v50 = vmul.f32 2.0, %v3887_v46 }
 0x181   :  { %v1614_v25 = vpop.permute.xlu1 %1613  ;;  %v1457_v15 = vpop.permute.xlu0 %1456  ;;  %v765_v59 = vsel %vm764_vm14, %v2031_v7, %v761_v37  ;;  %v966_v24 = vsub.f32 %v317_v13, %v950_v35  ;;  %v963_v13 = vsub.f32 %v3230_v36, %v947_v3  ;;  %vm632_vm1 = vcmp.eq.f32.partialorder %v631_v33, 8.507059e+37  ;;  %v3890_v37 = vld [vmem:[#allocation27_spill] sm:$0xff] }
 0x182   :  { %v1498_v0 = vmul.f32 %v1457_v15, %v1402_v58  ;;  %v770_v1 = vsel %vm767_vm15, %v769_v20, %v765_v59  ;;  %v338_v7 = vpop.f32.mrf.mxu3  ;;  %v3479_v11 = vsel %vm632_vm1, %v634_v32, %v630_v52  ;;  %v1763_v10 = vmul.f32 %v1614_v25, %v3406_v62  ;;  %v3891_v20 = vld [vmem:[#allocation37_spill] sm:$0xff]  ;;  %v3893_v32 = vld [vmem:[#allocation15_spill] sm:$0xff] }
 0x183   :  { %v3463_v41 = vmul.f32 %v770_v1, %v3887_v46  ;;  %v3465_v54 = vmul.f32 %v966_v24, %v665_v6  ;;  %v1379_v6 = vsub.f32 %v435_v18, %v3406_v62  ;;  %v979_v21 = vmul.f32 %v963_v13, %v3382_v28  ;;  %v427_v13 = vld [vmem:[#allocation5 + $0x50] sm:$0xff] }
 0x184   :  { %v1722_v51 = vadd.f32 %v1706_v17, %v1498_v0  ;;  %v3487_v30 = vmul.f32 %v3479_v11, %v3889_v12  ;;  %v1376_v43 = vmul.f32 %v1360_v2, %v3437_v57  ;;  %v820_v15 = vmul.f32 2.0, %v3889_v12  ;;  %v436_v12 = vld [vmem:[#allocation7 + $0x18] sm:$0xff] }
 0x185   :  { %1678 = vperm.xlu2 %1977, %v3437_v57   ;;  %v925_v53 = vmul.f32 %v3394_v45, %v3463_v41  ;;  %v1395_v61 = vmul.f32 %v1379_v6, %v1379_v6  ;;  %v1683_v48 = vmul.f32 %v1614_v25, %v979_v21  ;;  %v3892_v25 = vld [vmem:[#allocation24_spill] sm:$0xff] }
 0x186   :  { %1738 = vst [vmem:[#allocation8 + $0x48] sm:$0xff] %v1722_v51  ;;  %v916_v39 = vmul.f32 %v3891_v20, %v3487_v30 }
 0x187   :  { %v3477_v36 = vpop.permute.xlu2 %1618  ;;  %1582 = vperm.xlu1 %1975, %v1360_v2   ;;  %1831 = vrot.lane.b32.xlu0 %v3888_v44, %s2177_s4  ;;  %v941_v31 = vsub.f32 %v829_v50, %v925_v53  ;;  %v1491_v28 = vmul.f32 %v3385_v4, %v1395_v61  ;;  %v443_v4 = vld [vmem:[#allocation7 + $0x50] sm:$0xff]  ;;  %v3894_v44 = vld [vmem:[#allocation32_spill] sm:$0xff] }
 0x188   :  { %v1755_v0 = vmul.f32 %v3447_v34, %v443_v4 }
 0x189   :  { %v565_v40 = vpop.permute.xlu1 %564  ;;  %v1518_v55 = vpop.permute.xlu0 %1517  ;;  %v957_v45 = vmul.f32 %v941_v31, %v3463_v41  ;;  %v1595_v31 = vmul.f32 %v3447_v34, %v427_v13  ;;  %v3897_v34 = vld [vmem:[#allocation21_spill] sm:$0xff] }
 0x18a   :  { %2032 = vrcp.f32 %v565_v40  ;;  %v1587_v23 = vmul.f32 %v1518_v55, %v419_v29  ;;  %v1747_v19 = vmul.f32 %v1518_v55, %v435_v18  ;;  %v783_v63 = vand.u32 2147483648, %v565_v40 }
 0x18b   :  { %v973_v3 = vsub.f32 %v338_v7, %v957_v45  ;;  %v1387_v7 = vsub.f32 %v443_v4, %v3199_v22  ;;  %v781_v52 = vand.u32 2147483647, %v565_v40  ;;  %vm777_vm4 = vweird.f32 %v565_v40 }
 0x18c   :  { %v1699_v58 = vadd.f32 %v1683_v48, %v1587_v23  ;;  %v1779_v35 = vadd.f32 %v1763_v10, %v1747_v19  ;;  %v784_v21 = vor.u32 1.1754944e-38, %v783_v63  ;;  %v3896_v23 = vld [vmem:[#allocation26_spill] sm:$0xff] }
 0x18d   :  { %1835 = vrot.lane.b32.xlu2 %v3890_v37, %s2177_s4  ;;  %v3494_v8 = vmul.f32 %v973_v3, %v770_v1  ;;  %v932_v1 = vsub.f32 %v820_v15, %v916_v39  ;;  %v1403_v29 = vmul.f32 %v1387_v7, %v1387_v7  ;;  %vm782_vm6 = vcmp.eq.f32.partialorder %v781_v52, 8.507059e+37  ;;  %v3899_v39 = vld [vmem:[#allocation18_spill] sm:$0xff] }
 0x18e   :  { %v1715_v26 = vadd.f32 %v1699_v58, %v1491_v28  ;;  %1795 = vst [vmem:[#allocation9 + $0x10] sm:$0xff] %v1779_v35  ;;  %v1380_v28 = vsub.f32 %v436_v12, %v3487_v30  ;;  %v830_v58 = vmul.f32 2.0, %v3896_v23  ;;  %v3901_v52 = vld [vmem:[#allocation30_spill] sm:$0xff] }
 0x18f   :  { %v3498_v62 = vpop.permute.xlu2 %569  ;;  %1833 = vrot.lane.b32.xlu1 %v3892_v25, %s2177_s4  ;;  %1486 = vperm.xlu0 %1976, %v1376_v43   ;;  %v948_v50 = vmul.f32 %v932_v1, %v3487_v30  ;;  %v341_v43 = vpop.f32.mrf.mxu3 }
 0x190   :  { %v2033_v57 = vpop.eup %2032  ;;  %1731 = vst [vmem:[#allocation8 + $0x10] sm:$0xff] %v1715_v26  ;;  %v420_v26 = vld [vmem:[#allocation5 + $0x18] sm:$0xff]  ;;  %v1396_v15 = vmul.f32 %v1380_v28, %v1380_v28  ;;  %vm792_vm12 = vweird.f32 %v3498_v62 }
 0x191   :  { %v773_v59 = vmul.f32 %v2033_v57, %v565_v40  ;;  %v3503_v24 = vpop.permute.xlu1 %865  ;;  %v1654_v17 = vpop.permute.xlu0 %1653  ;;  %vm778_vm2 = vweird.f32 %v2033_v57  ;;  %v964_v10 = vsub.f32 %v3286_v42, %v948_v50  ;;  %v3898_v42 = vld [vmem:[#allocation19_spill] sm:$0xff] }
 0x192   :  { %v1771_v33 = vmul.f32 %v1654_v17, %v3199_v22  ;;  %v1691_v2 = vmul.f32 %v1654_v17, %v3298_v47  ;;  %v3895_v22 = vld [vmem:[#allocation29_spill] sm:$0xff]  ;;  %vm779_vm5 = vmor %vm777_vm4, %vm778_vm2  ;;  %v1764_v17 = vmul.f32 %v3477_v36, %v3487_v30 }
 0x193   :  { %v774_v18 = vsub.f32 1.0, %v773_v59  ;;  %v980_v37 = vmul.f32 %v964_v10, %v3479_v11 }
 0x194   :  { %v1787_v46 = vadd.f32 %v1771_v33, %v1755_v0  ;;  %v1707_v40 = vadd.f32 %v1691_v2, %v1595_v31  ;;  %v444_v2 = vld [vmem:[#allocation7 + $0x58] sm:$0xff] }
 0x195   :  { %v775_v51 = vmul.f32 %v2033_v57, %v774_v18  ;;  %1841 = vrot.lane.b32.xlu2 %v3893_v32, %s2177_s4  ;;  %v1388_v50 = vsub.f32 %v444_v2, %v3244_v56 }
 0x196   :  { %1803 = vst [vmem:[#allocation9 + $0x50] sm:$0xff] %v1787_v46  ;;  %v3900_v46 = vld [vmem:[#allocation33_spill] sm:$0xff] }
 0x197   :  { %v776_v53 = vadd.f32 %v2033_v57, %v775_v51  ;;  %v3512_v6 = vpop.permute.xlu2 %870  ;;  %1839 = vrot.lane.b32.xlu1 %v3894_v44, %s2177_s4  ;;  %1837 = vrot.lane.b32.xlu0 %v3895_v22, %s2177_s4  ;;  %v428_v44 = vld [vmem:[#allocation5 + $0x58] sm:$0xff]  ;;  %v437_v22 = vld [vmem:[#allocation7 + $0x20] sm:$0xff] }
 0x199   :  { %v780_v55 = vsel %vm779_vm5, %v2033_v57, %v776_v53  ;;  %v1462_v47 = vpop.permute.xlu1 %1461  ;;  %v3519_v45 = vpop.permute.xlu0 %529  ;;  %v1684_v57 = vmul.f32 %v3477_v36, %v980_v37  ;;  %v3902_v36 = vld [vmem:[#allocation25_spill] sm:$0xff] }
 0x19a   :  { %v785_v61 = vsel %vm782_vm6, %v784_v21, %v780_v55  ;;  %v1499_v48 = vmul.f32 %v1462_v47, %v1403_v29  ;;  %2034 = vrcp.f32 %v3519_v45  ;;  %v1404_v55 = vmul.f32 %v1388_v50, %v1388_v50 }
 0x19b   :  { %v3523_v19 = vmul.f32 %v785_v61, %v3896_v23  ;;  %2036 = vrcp.f32 %v3498_v62  ;;  %vm672_vm8 = vweird.f32 %v3519_v45 }
 0x19c   :  { %v1723_v3 = vadd.f32 %v1707_v40, %v1499_v48 }
 0x19d   :  { %1847 = vrot.lane.b32.xlu2 %v3897_v34, %s2177_s4  ;;  %v926_v35 = vmul.f32 %v3423_v49, %v3523_v19 }
 0x19e   :  { %1739 = vst [vmem:[#allocation8 + $0x50] sm:$0xff] %v1723_v3 }
 0x19f   :  { %v1467_v20 = vpop.permute.xlu2 %1466  ;;  %1845 = vrot.lane.b32.xlu1 %v3898_v42, %s2177_s4  ;;  %1843 = vrot.lane.b32.xlu0 %v3899_v39, %s2177_s4  ;;  %v942_v25 = vsub.f32 %v830_v58, %v926_v35 }
 0x1a0   :  { %v2035_v29 = vpop.eup %2034 }
 0x1a1   :  { %v1523_v4 = vpop.permute.xlu1 %1522  ;;  %v1427_v59 = vpop.permute.xlu0 %1426  ;;  %v958_v11 = vmul.f32 %v942_v25, %v3523_v19  ;;  %v668_v10 = vmul.f32 %v2035_v29, %v3519_v45  ;;  %vm673_vm7 = vweird.f32 %v2035_v29 }
 0x1a2   :  { %v1588_v49 = vmul.f32 %v1523_v4, %v420_v26  ;;  %v1748_v0 = vmul.f32 %v1523_v4, %v436_v12  ;;  %v1492_v18 = vmul.f32 %v1427_v59, %v1396_v15  ;;  %v1381_v12 = vsub.f32 %v437_v22, %v3343_v38  ;;  %v3565_v37 = vpop.eup %2036  ;;  %vm674_vm9 = vmor %vm672_vm8, %vm673_vm7 }
 0x1a3   :  { %v974_v63 = vsub.f32 %v341_v43, %v958_v11  ;;  %v421_v43 = vld [vmem:[#allocation5 + $0x20] sm:$0xff]  ;;  %v669_v58 = vsub.f32 1.0, %v668_v10  ;;  %v788_v15 = vmul.f32 %v3565_v37, %v3498_v62  ;;  %vm793_vm11 = vweird.f32 %v3565_v37 }
 0x1a4   :  { %v1700_v33 = vadd.f32 %v1684_v57, %v1588_v49  ;;  %v1780_v1 = vadd.f32 %v1764_v17, %v1748_v0  ;;  %v796_v10 = vand.u32 2147483647, %v3498_v62  ;;  %vm3605_vm13 = vmor %vm792_vm12, %vm793_vm11 }
 0x1a5   :  { %1853 = vrot.lane.b32.xlu2 %v3900_v46, %s2177_s4  ;;  %v3542_v13 = vmul.f32 %v974_v63, %v785_v61  ;;  %v670_v59 = vmul.f32 %v2035_v29, %v669_v58  ;;  %v789_v0 = vsub.f32 1.0, %v788_v15  ;;  %v676_v63 = vand.u32 2147483647, %v3519_v45 }
 0x1a6   :  { %1796 = vst [vmem:[#allocation9 + $0x18] sm:$0xff] %v1780_v1  ;;  %v1716_v7 = vadd.f32 %v1700_v33, %v1492_v18  ;;  %v445_v33 = vld [vmem:[#allocation7 + $0x60] sm:$0xff]  ;;  %v678_v18 = vand.u32 2147483648, %v3519_v45  ;;  %vm797_vm14 = vcmp.eq.f32.partialorder %v796_v10, 8.507059e+37 }
 0x1a7   :  { %v1528_v51 = vpop.permute.xlu2 %1527  ;;  %1851 = vrot.lane.b32.xlu1 %v3901_v52, %s2177_s4  ;;  %1849 = vrot.lane.b32.xlu0 %v3902_v36, %s2177_s4  ;;  %v1389_v46 = vsub.f32 %v445_v33, %v3463_v41  ;;  %vm677_vm10 = vcmp.eq.f32.partialorder %v676_v63, 8.507059e+37 }
 0x1a8   :  { %1732 = vst [vmem:[#allocation8 + $0x18] sm:$0xff] %v1716_v7  ;;  %v1589_v42 = vmul.f32 %v1528_v51, %v421_v43  ;;  %v1749_v39 = vmul.f32 %v1528_v51, %v437_v22  ;;  %v790_v7 = vmul.f32 %v3565_v37, %v789_v0  ;;  %v679_v36 = vor.u32 1.1754944e-38, %v678_v18 }
 0x1a9   :  { %v1659_v30 = vpop.permute.xlu1 %1658  ;;  %v3548_v32 = vpop.permute.xlu0 %905  ;;  %v798_v22 = vand.u32 2147483648, %v3498_v62 }
 0x1aa   :  { %v1692_v47 = vmul.f32 %v1659_v30, %v3321_v5  ;;  %v1772_v61 = vmul.f32 %v1659_v30, %v3244_v56  ;;  %v1397_v5 = vmul.f32 %v1381_v12, %v1381_v12  ;;  %v791_v45 = vadd.f32 %v3565_v37, %v790_v7 }
 0x1af   :  { %v3552_v53 = vpop.permute.xlu2 %1663  ;;  %1855 = vrot.lane.b32.xlu0 %v2943_v14, %s2177_s4  ;;  %v1500_v14 = vmul.f32 %v1467_v20, %v1404_v55  ;;  %v438_v55 = vld [vmem:[#allocation7 + $0x28] sm:$0xff] }
 0x1b0   :  { %v1382_v43 = vsub.f32 %v438_v55, %v3429_v60 }
 0x1b1   :  { %v3556_v31 = vpop.permute.xlu1 %534  ;;  %v1563_v21 = vpop.permute.xlu0 %1562 }
 0x1b2   :  { %v1596_v40 = vmul.f32 %v1563_v21, %v428_v44  ;;  %v1756_v48 = vmul.f32 %v1563_v21, %v444_v2  ;;  %2038 = vrcp.f32 %v3556_v31  ;;  %v429_v2 = vld [vmem:[#allocation5 + $0x60] sm:$0xff]  ;;  %v1405_v44 = vmul.f32 %v1389_v46, %v1389_v46  ;;  %v320_v46 = vpop.f32.mrf.mxu1 }
 0x1b3   :  { %vm687_vm0 = vweird.f32 %v3556_v31  ;;  %v691_v18 = vand.u32 2147483647, %v3556_v31 }
 0x1b4   :  { %v1708_v23 = vadd.f32 %v1692_v47, %v1596_v40  ;;  %v1788_v3 = vadd.f32 %v1772_v61, %v1756_v48  ;;  %v1693_v61 = vmul.f32 %v3552_v53, %v3494_v8  ;;  %v1773_v40 = vmul.f32 %v3552_v53, %v3463_v41 }
 0x1b5   :  { %v795_v41 = vsel %vm3605_vm13, %v3565_v37, %v791_v45  ;;  %v430_v45 = vld [vmem:[#allocation5 + $0x68] sm:$0xff]  ;;  %vm692_vm2 = vcmp.eq.f32.partialorder %v691_v18, 8.507059e+37 }
 0x1b6   :  { %v1724_v34 = vadd.f32 %v1708_v23, %v1500_v14  ;;  %1804 = vst [vmem:[#allocation9 + $0x58] sm:$0xff] %v1788_v3  ;;  %v3903_v14 = vld [vmem:[#allocation28_spill] sm:$0xff] }
 0x1b7   :  { %v3563_v28 = vpop.permute.xlu2 %1436 }
 0x1b8   :  { %1740 = vst [vmem:[#allocation8 + $0x58] sm:$0xff] %v1724_v34  ;;  %v3578_v1 = vpop.eup %2038 }
 0x1b9   :  { %v1432_v56 = vpop.permute.xlu1 %1431  ;;  %v1624_v35 = vpop.permute.xlu0 %1623  ;;  %v683_v51 = vmul.f32 %v3578_v1, %v3556_v31  ;;  %vm688_vm15 = vweird.f32 %v3578_v1 }
 0x1ba   :  { %v1685_v26 = vmul.f32 %v1624_v35, %v3412_v9  ;;  %v1765_v20 = vmul.f32 %v1624_v35, %v3343_v38  ;;  %v1493_v25 = vmul.f32 %v1432_v56, %v1397_v5  ;;  %v671_v38 = vadd.f32 %v2035_v29, %v670_v59  ;;  %v446_v59 = vld [vmem:[#allocation7 + $0x68] sm:$0xff]  ;;  %vm3632_vm1 = vmor %vm687_vm0, %vm688_vm15 }
 0x1bb   :  { %v684_v21 = vsub.f32 1.0, %v683_v51  ;;  %v799_v5 = vor.u32 1.1754944e-38, %v798_v22 }
 0x1bc   :  { %v1701_v57 = vadd.f32 %v1685_v26, %v1589_v42  ;;  %v1781_v4 = vadd.f32 %v1765_v20, %v1749_v39  ;;  %v675_v52 = vsel %vm674_vm9, %v2035_v29, %v671_v38  ;;  %v422_v39 = vld [vmem:[#allocation5 + $0x28] sm:$0xff]  ;;  %v1398_v20 = vmul.f32 %v1382_v43, %v1382_v43  ;;  %v439_v43 = vld [vmem:[#allocation7 + $0x30] sm:$0xff] }
 0x1bd   :  { %v3590_v50 = vsel %vm677_vm10, %v679_v36, %v675_v52  ;;  %v685_v53 = vmul.f32 %v3578_v1, %v684_v21  ;;  %v3620_v26 = vsel %vm797_vm14, %v799_v5, %v795_v41 }
 0x1be   :  { %v1717_v17 = vadd.f32 %v1701_v57, %v1493_v25  ;;  %1797 = vst [vmem:[#allocation9 + $0x20] sm:$0xff] %v1781_v4  ;;  %v3603_v23 = vmul.f32 %v3590_v50, %v3903_v14  ;;  %v823_v25 = vmul.f32 2.0, %v3903_v14  ;;  %v693_v57 = vand.u32 2147483648, %v3556_v31 }
 0x1bf   :  { %v3572_v49 = vpop.permute.xlu2 %1572  ;;  %v686_v37 = vadd.f32 %v3578_v1, %v685_v53  ;;  %v1494_v51 = vmul.f32 %v3563_v28, %v1398_v20  ;;  %v1390_v31 = vsub.f32 %v446_v59, %v3523_v19 }
 0x1c0   :  { %1733 = vst [vmem:[#allocation8 + $0x20] sm:$0xff] %v1717_v17  ;;  %v919_v35 = vmul.f32 %v3503_v24, %v3603_v23  ;;  %v1758_v10 = vmul.f32 %v3572_v49, %v446_v59 }
 0x1c1   :  { %v3574_v11 = vpop.permute.xlu1 %910  ;;  %v3576_v9 = vpop.permute.xlu0 %574 }
 0x1c2   :  { %2040 = vrcp.f32 %v3576_v9  ;;  %v935_v63 = vsub.f32 %v823_v25, %v919_v35  ;;  %v1383_v35 = vsub.f32 %v439_v43, %v3603_v23  ;;  %vm807_vm5 = vweird.f32 %v3576_v9 }
 0x1c7   :  { %v3587_v30 = vpop.permute.xlu2 %1633 }
 0x1c8   :  { %v3614_v62 = vpop.eup %2040 }
 0x1c9   :  { %v1568_v47 = vpop.permute.xlu1 %1567  ;;  %v1472_v29 = vpop.permute.xlu0 %1471  ;;  %v803_v4 = vmul.f32 %v3614_v62, %v3576_v9  ;;  %vm808_vm4 = vweird.f32 %v3614_v62 }
 0x1ca   :  { %v1597_v48 = vmul.f32 %v1568_v47, %v429_v2  ;;  %v1757_v12 = vmul.f32 %v1568_v47, %v445_v33  ;;  %v1501_v58 = vmul.f32 %v1472_v29, %v1405_v44  ;;  %v3908_v2 = vld [vmem:[#allocation31_spill] sm:$0xff]  ;;  %v694_v44 = vor.u32 1.1754944e-38, %v693_v57  ;;  %vm3675_vm6 = vmor %vm807_vm5, %vm808_vm4 }
 0x1cb   :  { %v804_v22 = vsub.f32 1.0, %v803_v4  ;;  %v811_v4 = vand.u32 2147483647, %v3576_v9 }
 0x1cc   :  { %v1709_v8 = vadd.f32 %v1693_v61, %v1597_v48  ;;  %v1789_v34 = vadd.f32 %v1773_v40, %v1757_v12  ;;  %v1598_v61 = vmul.f32 %v3572_v49, %v430_v45  ;;  %v1406_v40 = vmul.f32 %v1390_v31, %v1390_v31  ;;  %v431_v31 = vld [vmem:[#allocation5 + $0x70] sm:$0xff] }
 0x1cd   :  { %v805_v14 = vmul.f32 %v3614_v62, %v804_v22  ;;  %vm812_vm7 = vcmp.eq.f32.partialorder %v811_v4, 8.507059e+37 }
 0x1ce   :  { %1805 = vst [vmem:[#allocation9 + $0x60] sm:$0xff] %v1789_v34  ;;  %v1725_v56 = vadd.f32 %v1709_v8, %v1501_v58  ;;  %v344_v8 = vpop.f32.mrf.mxu3 }
 0x1cf   :  { %v3618_v42 = vpop.permute.xlu2 %1481 }
 0x1d0   :  { %1741 = vst [vmem:[#allocation8 + $0x60] sm:$0xff] %v1725_v56 }
 0x1d1   :  { %v1629_v15 = vpop.permute.xlu1 %1628  ;;  %v1533_v24 = vpop.permute.xlu0 %1532 }
 0x1d2   :  { %v1686_v17 = vmul.f32 %v1629_v15, %v3465_v54  ;;  %v1766_v0 = vmul.f32 %v1629_v15, %v3429_v60  ;;  %v1590_v38 = vmul.f32 %v1533_v24, %v422_v39  ;;  %v1750_v33 = vmul.f32 %v1533_v24, %v438_v55 }
 0x1d3   :  { %v3639_v54 = vmul.f32 %v3620_v26, %v3908_v2  ;;  %v690_v60 = vsel %vm3632_vm1, %v3578_v1, %v686_v37  ;;  %v951_v55 = vmul.f32 %v935_v63, %v3603_v23  ;;  %v831_v1 = vmul.f32 2.0, %v3908_v2  ;;  %v423_v37 = vld [vmem:[#allocation5 + $0x30] sm:$0xff] }
 0x1d4   :  { %v1702_v52 = vadd.f32 %v1686_v17, %v1590_v38  ;;  %v1782_v36 = vadd.f32 %v1766_v0, %v1750_v33  ;;  %v3650_v29 = vsel %vm692_vm2, %v694_v44, %v690_v60  ;;  %v806_v39 = vadd.f32 %v3614_v62, %v805_v14 }
 0x1d5   :  { %v927_v28 = vmul.f32 %v3548_v32, %v3639_v54  ;;  %v967_v58 = vsub.f32 %v320_v46, %v951_v55  ;;  %v3660_v41 = vmul.f32 %v3650_v29, %v2743_v27  ;;  %v1399_v17 = vmul.f32 %v1383_v35, %v1383_v35  ;;  %v440_v55 = vld [vmem:[#allocation7 + $0x38] sm:$0xff] }
 0x1d6   :  { %v1718_v21 = vadd.f32 %v1702_v52, %v1494_v51  ;;  %1798 = vst [vmem:[#allocation9 + $0x28] sm:$0xff] %v1782_v36  ;;  %v824_v0 = vmul.f32 2.0, %v2743_v27  ;;  %v1767_v38 = vmul.f32 %v3587_v30, %v3603_v23  ;;  %v810_v33 = vsel %vm3675_vm6, %v3614_v62, %v806_v39  ;;  %v323_v51 = vpop.f32.mrf.mxu1 }
 0x1d7   :  { %v3648_v47 = vpop.permute.xlu2 %1542  ;;  %v943_v34 = vsub.f32 %v831_v1, %v927_v28  ;;  %v983_v20 = vmul.f32 %v967_v58, %v3590_v50  ;;  %v920_v57 = vmul.f32 %v3512_v6, %v3660_v41  ;;  %v447_v6 = vld [vmem:[#allocation7 + $0x70] sm:$0xff] }
 0x1d8   :  { %1734 = vst [vmem:[#allocation8 + $0x28] sm:$0xff] %v1718_v21  ;;  %v1391_v27 = vsub.f32 %v447_v6, %v3639_v54 }
 0x1d9   :  { %v1477_v48 = vpop.permute.xlu1 %1476  ;;  %v1669_v12 = vpop.permute.xlu0 %1668  ;;  %v1687_v15 = vmul.f32 %v3587_v30, %v983_v20  ;;  %v936_v7 = vsub.f32 %v824_v0, %v920_v57 }
 0x1da   :  { %v1694_v32 = vmul.f32 %v1669_v12, %v3542_v13  ;;  %v1774_v3 = vmul.f32 %v1669_v12, %v3523_v19  ;;  %v1502_v53 = vmul.f32 %v1477_v48, %v1406_v40  ;;  %v959_v19 = vmul.f32 %v943_v34, %v3639_v54  ;;  %v424_v34 = vld [vmem:[#allocation5 + $0x38] sm:$0xff] }
 0x1db   :  { %v813_v13 = vand.u32 2147483648, %v3576_v9  ;;  %v952_v44 = vmul.f32 %v936_v7, %v3660_v41  ;;  %v1407_v22 = vmul.f32 %v1391_v27, %v1391_v27  ;;  %v1592_v35 = vmul.f32 %v3648_v47, %v424_v34 }
 0x1dc   :  { %v1710_v5 = vadd.f32 %v1694_v32, %v1598_v61  ;;  %v1790_v56 = vadd.f32 %v1774_v3, %v1758_v10  ;;  %v975_v46 = vsub.f32 %v344_v8, %v959_v19  ;;  %v1384_v3 = vsub.f32 %v440_v55, %v3660_v41 }
 0x1dd   :  { %v814_v63 = vor.u32 1.1754944e-38, %v813_v13  ;;  %v968_v12 = vsub.f32 %v323_v51, %v952_v44  ;;  %v1503_v10 = vmul.f32 %v3618_v42, %v1407_v22 }
 0x1de   :  { %v1726_v49 = vadd.f32 %v1710_v5, %v1502_v53  ;;  %1806 = vst [vmem:[#allocation9 + $0x68] sm:$0xff] %v1790_v56  ;;  %v991_v45 = vmul.f32 %v975_v46, %v3620_v26  ;;  %v347_v53 = vpop.f32.mrf.mxu3 }
 0x1df   :  { %v3668_v25 = vpop.permute.xlu2 %1678  ;;  %v815_v60 = vsel %vm812_vm7, %v814_v63, %v810_v33 }
 0x1e0   :  { %1742 = vst [vmem:[#allocation8 + $0x68] sm:$0xff] %v1726_v49  ;;  %v816_v62 = vmul.f32 %v815_v60, %v3881_v16 }
 0x1e1   :  { %v1538_v59 = vpop.permute.xlu1 %1537  ;;  %v1442_v50 = vpop.permute.xlu0 %1441 }
 0x1e2   :  { %v1591_v9 = vmul.f32 %v1538_v59, %v423_v37  ;;  %v1751_v18 = vmul.f32 %v1538_v59, %v439_v43  ;;  %v1495_v2 = vmul.f32 %v1442_v50, %v1399_v17  ;;  %v928_v14 = vmul.f32 %v3574_v11, %v816_v62  ;;  %v432_v17 = vld [vmem:[#allocation5 + $0x78] sm:$0xff] }
 0x1e3   :  { %v832_v43 = vmul.f32 2.0, %v3881_v16  ;;  %v1400_v11 = vmul.f32 %v1384_v3, %v1384_v3  ;;  %v1752_v16 = vmul.f32 %v3648_v47, %v440_v55 }
 0x1e4   :  { %v1703_v52 = vadd.f32 %v1687_v15, %v1591_v9  ;;  %v1783_v36 = vadd.f32 %v1767_v38, %v1751_v18  ;;  %v448_v15 = vld [vmem:[#allocation7 + $0x78] sm:$0xff] }
 0x1e5   :  { %v944_v5 = vsub.f32 %v832_v43, %v928_v14  ;;  %v1392_v38 = vsub.f32 %v448_v15, %v816_v62 }
 0x1e6   :  { %1799 = vst [vmem:[#allocation9 + $0x30] sm:$0xff] %v1783_v36  ;;  %v1719_v30 = vadd.f32 %v1703_v52, %v1495_v2 }
 0x1e7   :  { %v1836_v23 = vpop.permute.xlu2 %1835  ;;  %v960_v19 = vmul.f32 %v944_v5, %v816_v62  ;;  %v1408_v18 = vmul.f32 %v1392_v38, %v1392_v38 }
 0x1e8   :  { %1735 = vst [vmem:[#allocation8 + $0x30] sm:$0xff] %v1719_v30 }
 0x1e9   :  { %1879 = vst.msk [vmem:[%s3771_s7 + $0x28] sm:$0xff] %vm1873_vm3, %v1836_v23  ;;  %v1674_v21 = vpop.permute.xlu1 %1673  ;;  %v1578_v28 = vpop.permute.xlu0 %1577  ;;  %v976_v4 = vsub.f32 %v347_v53, %v960_v19 }
 0x1ea   :  { %v1695_v1 = vmul.f32 %v1674_v21, %v991_v45  ;;  %v1775_v61 = vmul.f32 %v1674_v21, %v3639_v54  ;;  %v1599_v40 = vmul.f32 %v1578_v28, %v431_v31  ;;  %v1759_v48 = vmul.f32 %v1578_v28, %v447_v6 }
 0x1eb   :  { %v984_v54 = vmul.f32 %v968_v12, %v3650_v29  ;;  %v992_v50 = vmul.f32 %v976_v4, %v815_v60 }
 0x1ec   :  { %v1711_v26 = vadd.f32 %v1695_v1, %v1599_v40  ;;  %v1791_v32 = vadd.f32 %v1775_v61, %v1759_v48 }
 0x1ed   :  { %v1696_v9 = vmul.f32 %v3668_v25, %v992_v50 }
 0x1ee   :  { %v1727_v8 = vadd.f32 %v1711_v26, %v1503_v10  ;;  %1807 = vst [vmem:[#allocation9 + $0x70] sm:$0xff] %v1791_v32 }
 0x1ef   :  { %v1842_v58 = vpop.permute.xlu2 %1841 }
 0x1f0   :  { %1743 = vst [vmem:[#allocation8 + $0x70] sm:$0xff] %v1727_v8 }
 0x1f1   :  { %1882 = vst.msk [vmem:[%s3771_s7 + $0x40] sm:$0xff] %vm1873_vm3, %v1842_v58  ;;  %v1447_v42 = vpop.permute.xlu1 %1446  ;;  %v1639_v56 = vpop.permute.xlu0 %1638 }
 0x1f2   :  { %v1688_v49 = vmul.f32 %v1639_v56, %v984_v54  ;;  %v1768_v39 = vmul.f32 %v1639_v56, %v3660_v41  ;;  %v1496_v13 = vmul.f32 %v1447_v42, %v1400_v11  ;;  %v1776_v41 = vmul.f32 %v3668_v25, %v816_v62 }
 0x1f4   :  { %v1704_v20 = vadd.f32 %v1688_v49, %v1592_v35  ;;  %v1784_v37 = vadd.f32 %v1768_v39, %v1752_v16 }
 0x1f6   :  { %v1720_v29 = vadd.f32 %v1704_v20, %v1496_v13  ;;  %1800 = vst [vmem:[#allocation9 + $0x38] sm:$0xff] %v1784_v37 }
 0x1f7   :  { %v1848_v57 = vpop.permute.xlu2 %1847 }
 0x1f8   :  { %1736 = vst [vmem:[#allocation8 + $0x38] sm:$0xff] %v1720_v29 }
 0x1f9   :  { %1885 = vst.msk [vmem:[%s3771_s7 + $0x58] sm:$0xff] %vm1873_vm3, %v1848_v57  ;;  %v1583_v24 = vpop.permute.xlu1 %1582  ;;  %v1832_v47 = vpop.permute.xlu0 %1831 }
 0x1fa   :  { %v1760_v59 = vmul.f32 %v1583_v24, %v448_v15  ;;  %1877 = vst.msk [vmem:[%s3771_s7 + $0x18] sm:$0xff] %vm1873_vm3, %v1832_v47  ;;  %v1600_v6 = vmul.f32 %v1583_v24, %v432_v17 }
 0x1fc   :  { %v1792_v0 = vadd.f32 %v1776_v41, %v1760_v59  ;;  %v1712_v7 = vadd.f32 %v1696_v9, %v1600_v6 }
 0x1fe   :  { %1808 = vst [vmem:[#allocation9 + $0x78] sm:$0xff] %v1792_v0 }
 0x1ff   :  { %v1854_v33 = vpop.permute.xlu2 %1853  ;;  %1915 = dma.vmem_to_hbm [thread:$0]  %s1908_s22, 2048, %s1910_s25, [#allocation10], %s2171_s9, %s2171_s9, %s2172_s10  }
 0x200   :  { %1888 = vst.msk [vmem:[%s3771_s7 + $0x70] sm:$0xff] %vm1873_vm3, %v1854_v33 }
 0x201   :  { %v1834_v63 = vpop.permute.xlu1 %1833  ;;  %v1487_v46 = vpop.permute.xlu0 %1486 }
 0x202   :  { %1878 = vst.msk [vmem:[%s3771_s7 + $0x20] sm:$0xff] %vm1873_vm3, %v1834_v63  ;;  %v1504_v25 = vmul.f32 %v1487_v46, %v1408_v18 }
 0x204   :  { %v1728_v51 = vadd.f32 %v1712_v7, %v1504_v25 }
 0x206   :  { %1744 = vst [vmem:[#allocation8 + $0x78] sm:$0xff] %v1728_v51 }
 0x207   :  { %1902 = dma.vmem_to_hbm [thread:$0]  %s1895_s30, 2048, %s1897_s0, [#allocation4], %s2171_s9, %s2171_s9, %s2172_s10  }
 0x209   :  { %v1840_v52 = vpop.permute.xlu1 %1839  ;;  %v1838_v36 = vpop.permute.xlu0 %1837 }
 0x20a   :  { %1881 = vst.msk [vmem:[%s3771_s7 + $0x38] sm:$0xff] %vm1873_vm3, %v1840_v52 }
 0x20b   :  { %1880 = vst.msk [vmem:[%s3771_s7 + $0x30] sm:$0xff] %vm1873_vm3, %v1838_v36 }
 0x211   :  { %v1846_v2 = vpop.permute.xlu1 %1845  ;;  %v1844_v27 = vpop.permute.xlu0 %1843 }
 0x212   :  { %1884 = vst.msk [vmem:[%s3771_s7 + $0x50] sm:$0xff] %vm1873_vm3, %v1846_v2 }
 0x213   :  { %1883 = vst.msk [vmem:[%s3771_s7 + $0x48] sm:$0xff] %vm1873_vm3, %v1844_v27 }
 0x219   :  { %v1852_v60 = vpop.permute.xlu1 %1851  ;;  %v1850_v30 = vpop.permute.xlu0 %1849 }
 0x21a   :  { %1887 = vst.msk [vmem:[%s3771_s7 + $0x68] sm:$0xff] %vm1873_vm3, %v1852_v60 }
 0x21b   :  { %1886 = vst.msk [vmem:[%s3771_s7 + $0x60] sm:$0xff] %vm1873_vm3, %v1850_v30 }
 0x221   :  { %v1856_v23 = vpop.permute.xlu0 %1855 }
 0x222   :  { %1889 = vst.msk [vmem:[%s3771_s7 + $0x78] sm:$0xff] %vm1873_vm3, %v1856_v23 }
 0x223   :  { %2166 = dma.done.wait [#allocation4], 2048  }
 0x224   :  { %2167 = vsyncadd [#allocation4], 4294965248 }
 0x225   :  { %2168 = dma.done.wait [#allocation10], 2048  }
 0x226   :  { %2169 = vsyncadd [#allocation10], 4294965248 }
 0x227   :  { %1928 = vsyncpa [#allocation3], 1 }
 0x228   :  { %1929 = vsyncpa [#allocation6], 1 }
 0x229   :  { %1930 = vsyncpa [#allocation4], 1 }
 0x22a   :  { %1931 = vsyncpa [#allocation10], 1 }

</bundles_post_ra>
